<compile_context>
chip_gen: v7x
topology: tpu7x:2x2x1
jax: 0.10.0
libtpu: 0.0.40
codegen_flags: <defaults>
</compile_context>

<pallas_src>
from functools import partial

import jax
import jax.numpy as jnp
from jax import lax
from jax.experimental import pallas as pl
from jax.experimental.pallas import tpu as pltpu


# ----------------------------------------------------------------------------
# Fused kernel: stem conv (im2col matmul) + ReLU + global avg pool, with a
# spatial-tile accumulator, then (on the last spatial tile) avg consensus
# folded before new_fc.  One grid step == one video x one spatial tile.
# ----------------------------------------------------------------------------
def _tsn_fused_kernel(p_ref, wt_ref, fcw_ref, fcb_ref, out_ref, acc_ref, *,
                      inv_count):
    # p_ref:   (1, T, K2, S_tile) bf16  im2col patches (K2 sublanes, spatial lanes)
    # wt_ref:  (D, K2)            bf16  conv weights + folded-bias row (transposed)
    # fcw_ref: (C, D)             f32   new_fc weight (transposed, column orientation)
    # fcb_ref: (C, 1)             f32   new_fc bias
    # out_ref: (1, C, 1)          f32   per-video logits (written on last tile)
    # acc_ref: (D, T)             f32   per-frame pooled-sum accumulator (scratch)
    s = pl.program_id(1)

    @pl.when(s == 0)
    def _init():
        acc_ref[...] = jnp.zeros_like(acc_ref)

    T = p_ref.shape[1]
    wt = wt_ref[...]                                         # (D, K2) bf16
    cols = []
    for f in range(T):                                       # static unroll over segments
        # 3x3 SAME conv for this frame's spatial tile as a single MXU matmul
        # (K2 = KH*KW*Cin + 1 folded-bias column), f32 accumulation.
        conv = jnp.dot(wt, p_ref[0, f, :, :],
                       preferred_element_type=jnp.float32)   # (D, S_tile) f32
        conv = jnp.maximum(conv, 0.0)                        # bias already folded; ReLU
        # AdaptiveAvgPool2d(1) numerator for this tile: sum over spatial lanes.
        cols.append(jnp.sum(conv, axis=1, keepdims=True))    # (D, 1)
    acc_ref[...] += jnp.concatenate(cols, axis=1)            # (D, T)

    @pl.when(s == pl.num_programs(1) - 1)
    def _finalize():
        # AdaptiveAvgPool2d(1) + avg consensus: both linear, folded before
        # new_fc, so one mean over (H*W * num_segments) per channel.
        mean_col = jnp.sum(acc_ref[...], axis=1, keepdims=True) * inv_count  # (D, 1)
        logits = jnp.dot(fcw_ref[...], mean_col,
                         preferred_element_type=jnp.float32) + fcb_ref[...]  # (C, 1)
        out_ref[0] = logits.astype(out_ref.dtype)


def _pick_spatial_tile(hw, requested=None):
    """Largest lane-aligned spatial tile that divides H*W (bounded for VMEM)."""
    if requested is not None:
        assert hw % requested == 0 and (requested % 128 == 0 or requested == hw), (
            hw, requested)
        return requested
    if hw % 128 != 0:
        return hw
    # <= 2048 keeps the double-buffered (T, K2, tile) bf16 block well under the
    # scoped-VMEM budget on every generation (v5e 16 MiB default < v6e/v7x
    # 32 MiB default < v7x 64 MiB physical).
    for cand in range(2048, 127, -128):
        if hw % cand == 0:
            return cand
    return hw


# ----------------------------------------------------------------------------
# Wrapper
# ----------------------------------------------------------------------------
def tsn_forward(x_nchw, conv_w, conv_b, fc_w, fc_b, num_segments,
                spatial_tile=None):
    """TSN.forward (RGB, new_length=1, avg consensus). Returns (N, num_class)."""
    N, CT, H, W = x_nchw.shape
    sample_len = 3                                  # 3 * new_length for RGB
    assert CT == num_segments * sample_len
    T = num_segments
    NT = N * T
    KH, KW, Cin, D = conv_w.shape
    assert Cin == sample_len
    num_class = fc_w.shape[1]
    HW = H * W
    ph, pw = KH // 2, KW // 2
    K = KH * KW * Cin
    K2 = K + 1                                      # +1: folded conv bias (ones row)

    # ---- layout plumbing in XLA: im2col in a lane-dense planar layout --------
    # (frames, K2 on sublanes, H*W on the 128-lane axis), bf16 MXU operands.
    x = x_nchw.reshape(NT, Cin, H, W).astype(jnp.bfloat16)
    xp = jnp.pad(x, ((0, 0), (0, 0), (ph, ph), (pw, pw)))          # SAME halo
    taps = [xp[:, :, kh:kh + H, kw:kw + W]                          # (NT,Cin,H,W)
            for kh in range(KH) for kw in range(KW)]
    patches = jnp.stack(taps, axis=1).reshape(NT, K, HW)            # tap-major, cin-minor
    ones = jnp.ones((NT, 1, HW), jnp.bfloat16)
    patches = jnp.concatenate([patches, ones], axis=1)              # (NT, K2, HW)
    patches = patches.reshape(N, T, K2, HW)
    # TODO(synk): at realistic 224x224 the KH*KW duplication (~9x input bytes in
    # HBM) could be avoided by streaming shifted taps in-kernel (planar layout)
    # or space-to-depth; still >4x less DMA than the old lane-sparse layout.

    # Conv weights (+ bias row) in the (D, K2) column orientation.
    w_k2d = jnp.concatenate([conv_w.reshape(K, D),
                             conv_b.reshape(1, D)], axis=0)         # (K2, D) f32
    w_t = jnp.transpose(w_k2d).astype(jnp.bfloat16)                 # (D, K2) bf16

    # new_fc in column orientation (no in-kernel transpose needed).
    fc_wt = jnp.transpose(fc_w).astype(jnp.float32)                 # (C, D)
    fc_bc = fc_b.reshape(num_class, 1).astype(jnp.float32)          # (C, 1)

    s_tile = _pick_spatial_tile(HW, spatial_tile)
    n_s = HW // s_tile
    inv_count = 1.0 / float(HW * T)

    out = pl.pallas_call(
        partial(_tsn_fused_kernel, inv_count=inv_count),
        out_shape=jax.ShapeDtypeStruct((N, num_class, 1), jnp.float32),
        grid_spec=pltpu.PrefetchScalarGridSpec(
            num_scalar_prefetch=0,
            # videos (parallel, even count for megacore) x spatial tiles
            # (reduction axis, last in the grid).
            grid=(N, n_s),
            in_specs=[
                pl.BlockSpec((1, T, K2, s_tile), lambda v, s: (v, 0, 0, s)),
                pl.BlockSpec((D, K2), lambda v, s: (0, 0)),
                pl.BlockSpec((num_class, D), lambda v, s: (0, 0)),
                pl.BlockSpec((num_class, 1), lambda v, s: (0, 0)),
            ],
            out_specs=pl.BlockSpec((1, num_class, 1), lambda v, s: (v, 0, 0)),
            scratch_shapes=[pltpu.VMEM((D, T), jnp.float32)],
        ),
        compiler_params=pltpu.CompilerParams(
            dimension_semantics=("parallel", "arbitrary"),
            vmem_limit_bytes=32 * 1024 * 1024),
    )(patches, w_t, fc_wt, fc_bc)

    return out.reshape(N, num_class)


# ----------------------------------------------------------------------------
# Pure-JAX reference (bf16-operand conv, f32 everything else -- PyTorch-faithful)
# ----------------------------------------------------------------------------
def tsn_forward_ref(x_nchw, conv_w, conv_b, fc_w, fc_b, num_segments):
    N, CT, H, W = x_nchw.shape
    NT = N * num_segments
    x = x_nchw.reshape(NT, 3, H, W).transpose(0, 2, 3, 1)
    y = lax.conv_general_dilated(
        x.astype(jnp.bfloat16), conv_w.astype(jnp.bfloat16),
        window_strides=(1, 1), padding="SAME",
        dimension_numbers=("NHWC", "HWIO", "NHWC"),
        preferred_element_type=jnp.float32)
    y = jnp.maximum(y + conv_b, 0.0)
    feats = jnp.mean(y, axis=(1, 2))                               # (NT, D)
    feats = feats.reshape(N, num_segments, -1).mean(axis=1)        # avg consensus
    return feats @ fc_w + fc_b                                     # (N, C)


if __name__ == "__main__":
    key = jax.random.PRNGKey(0)
    k_x, k_conv, k_convb, k_fc = jax.random.split(key, 4)

    # Small shapes consistent with the TSN forward (RGB, new_length=1).
    # feature_dim=128 keeps the conv output / fc contraction lane-dense.
    N, num_segments, H, W = 2, 8, 16, 16
    num_class, feature_dim = 8, 128
    Cin, KH, KW = 3, 3, 3

    x = jax.random.normal(k_x, (N, num_segments * 3, H, W), jnp.float32)

    # Synthetic backbone-stem parameters (deterministic init).
    conv_w = jax.random.normal(k_conv, (KH, KW, Cin, feature_dim),
                               jnp.float32) * 0.1
    conv_b = jax.random.normal(k_convb, (feature_dim,), jnp.float32) * 0.05

    # new_fc: normal_(weight, 0, 0.001), constant_(bias, 0)  (see _prepare_tsn)
    fc_w = (jax.random.normal(k_fc, (num_class, feature_dim),
                              jnp.float32) * 0.001).T               # (D, C)
    fc_b = jnp.zeros((num_class,), jnp.float32)

    # spatial_tile=128 -> two spatial tiles: exercises the pooled-sum
    # accumulator (init / finalize) path.
    out = tsn_forward(x, conv_w, conv_b, fc_w, fc_b, num_segments,
                      spatial_tile=128)
    out = jax.block_until_ready(out)
    assert out.shape == (N, num_class), out.shape

    ref = tsn_forward_ref(x, conv_w, conv_b, fc_w, fc_b, num_segments)
    assert jnp.allclose(out, ref, atol=1e-5, rtol=1e-3), (out, ref)

    print("KERNEL_OK")
</pallas_src>

<mosaic_0001>
module attributes {stable_mosaic.version = 11 : i64} {
  func.func @_tsn_fused_kernel(%arg0: i32, %arg1: i32, %arg2: memref<1x8x28x128xbf16, #tpu.memory_space<vmem>>, %arg3: memref<128x28xbf16, #tpu.memory_space<vmem>>, %arg4: memref<8x128xf32, #tpu.memory_space<vmem>>, %arg5: memref<8x1xf32, #tpu.memory_space<vmem>>, %arg6: memref<1x8x1xf32, #tpu.memory_space<vmem>>, %arg7: memref<128x8xf32, #tpu.memory_space<vmem>>) attributes {dimension_semantics = [#tpu.dimension_semantics<parallel>, #tpu.dimension_semantics<arbitrary>], iteration_bounds = array<i64: 2, 2>, scalar_prefetch = 0 : i64, scratch_operands = 1 : i64, tpu.core_type = #tpu.core_type<tc>, window_params = [{transform_indices = @transform_0, window_bounds = array<i64: 1, 8, 28, 128>}, {pipeline_mode = #tpu.pipeline_mode<synchronous>, transform_indices = @transform_1, window_bounds = array<i64: 128, 28>}, {pipeline_mode = #tpu.pipeline_mode<synchronous>, transform_indices = @transform_2, window_bounds = array<i64: 8, 128>}, {pipeline_mode = #tpu.pipeline_mode<synchronous>, transform_indices = @transform_3, window_bounds = array<i64: 8, 1>}, {transform_indices = @transform_4, window_bounds = array<i64: 1, 8, 1>}]} {
    %c0_i32 = arith.constant 0 : i32
    %0 = arith.cmpi eq, %arg1, %c0_i32 : i32
    %1 = arith.extui %0 : i1 to i32
    %c0_i32_0 = arith.constant 0 : i32
    %2 = arith.cmpi ne, %1, %c0_i32_0 : i32
    scf.if %2 {
      %cst_55 = arith.constant 0.000000e+00 : f32
      %67 = vector.broadcast %cst_55 : f32 to vector<128x8xf32>
      %c0_56 = arith.constant 0 : index
      %c0_57 = arith.constant 0 : index
      %68 = vector.load %arg7[%c0_56, %c0_57] : memref<128x8xf32, #tpu.memory_space<vmem>>, vector<128x8xf32>
      tpu.vector_store %arg7[%c0_56, %c0_57], %67 {strides = array<i32>} : memref<128x8xf32, #tpu.memory_space<vmem>>, vector<128x8xf32>,
    } else {
    }
    %c0 = arith.constant 0 : index
    %c0_1 = arith.constant 0 : index
    %3 = vector.load %arg3[%c0, %c0_1] : memref<128x28xbf16, #tpu.memory_space<vmem>>, vector<128x28xbf16>
    %c0_2 = arith.constant 0 : index
    %c0_3 = arith.constant 0 : index
    %c0_4 = arith.constant 0 : index
    %c0_5 = arith.constant 0 : index
    %4 = vector.load %arg2[%c0_2, %c0_3, %c0_4, %c0_5] : memref<1x8x28x128xbf16, #tpu.memory_space<vmem>>, vector<1x1x28x128xbf16>
    %5 = vector.shape_cast %4 : vector<1x1x28x128xbf16> to vector<28x128xbf16>
    %cst = arith.constant dense<0.000000e+00> : vector<128x128xf32>
    %6 = tpu.matmul %3, %5, %cst {dimension_numbers = #tpu.dot_dimension_numbers<[1], [0], [0], [1], [0, 0, 1, 1], [], []>} : vector<128x28xbf16>, vector<28x128xbf16>, vector<128x128xf32> -> vector<128x128xf32>
    %cst_6 = arith.constant 0.000000e+00 : f32
    %7 = vector.broadcast %cst_6 : f32 to vector<128x128xf32>
    %8 = arith.maximumf %6, %7 : vector<128x128xf32>
    %cst_7 = arith.constant dense<0.000000e+00> : vector<128xf32>
    %9 = vector.multi_reduction <add>, %8, %cst_7 [1] : vector<128x128xf32> to vector<128xf32>
    %10 = vector.shape_cast %9 : vector<128xf32> to vector<128x1xf32>
    %c0_8 = arith.constant 0 : index
    %c1 = arith.constant 1 : index
    %c0_9 = arith.constant 0 : index
    %c0_10 = arith.constant 0 : index
    %11 = vector.load %arg2[%c0_8, %c1, %c0_9, %c0_10] : memref<1x8x28x128xbf16, #tpu.memory_space<vmem>>, vector<1x1x28x128xbf16>
    %12 = vector.shape_cast %11 : vector<1x1x28x128xbf16> to vector<28x128xbf16>
    %cst_11 = arith.constant dense<0.000000e+00> : vector<128x128xf32>
    %13 = tpu.matmul %3, %12, %cst_11 {dimension_numbers = #tpu.dot_dimension_numbers<[1], [0], [0], [1], [0, 0, 1, 1], [], []>} : vector<128x28xbf16>, vector<28x128xbf16>, vector<128x128xf32> -> vector<128x128xf32>
    %cst_12 = arith.constant 0.000000e+00 : f32
    %14 = vector.broadcast %cst_12 : f32 to vector<128x128xf32>
    %15 = arith.maximumf %13, %14 : vector<128x128xf32>
    %cst_13 = arith.constant dense<0.000000e+00> : vector<128xf32>
    %16 = vector.multi_reduction <add>, %15, %cst_13 [1] : vector<128x128xf32> to vector<128xf32>
    %17 = vector.shape_cast %16 : vector<128xf32> to vector<128x1xf32>
    %c0_14 = arith.constant 0 : index
    %c2 = arith.constant 2 : index
    %c0_15 = arith.constant 0 : index
    %c0_16 = arith.constant 0 : index
    %18 = vector.load %arg2[%c0_14, %c2, %c0_15, %c0_16] : memref<1x8x28x128xbf16, #tpu.memory_space<vmem>>, vector<1x1x28x128xbf16>
    %19 = vector.shape_cast %18 : vector<1x1x28x128xbf16> to vector<28x128xbf16>
    %cst_17 = arith.constant dense<0.000000e+00> : vector<128x128xf32>
    %20 = tpu.matmul %3, %19, %cst_17 {dimension_numbers = #tpu.dot_dimension_numbers<[1], [0], [0], [1], [0, 0, 1, 1], [], []>} : vector<128x28xbf16>, vector<28x128xbf16>, vector<128x128xf32> -> vector<128x128xf32>
    %cst_18 = arith.constant 0.000000e+00 : f32
    %21 = vector.broadcast %cst_18 : f32 to vector<128x128xf32>
    %22 = arith.maximumf %20, %21 : vector<128x128xf32>
    %cst_19 = arith.constant dense<0.000000e+00> : vector<128xf32>
    %23 = vector.multi_reduction <add>, %22, %cst_19 [1] : vector<128x128xf32> to vector<128xf32>
    %24 = vector.shape_cast %23 : vector<128xf32> to vector<128x1xf32>
    %c0_20 = arith.constant 0 : index
    %c3 = arith.constant 3 : index
    %c0_21 = arith.constant 0 : index
    %c0_22 = arith.constant 0 : index
    %25 = vector.load %arg2[%c0_20, %c3, %c0_21, %c0_22] : memref<1x8x28x128xbf16, #tpu.memory_space<vmem>>, vector<1x1x28x128xbf16>
    %26 = vector.shape_cast %25 : vector<1x1x28x128xbf16> to vector<28x128xbf16>
    %cst_23 = arith.constant dense<0.000000e+00> : vector<128x128xf32>
    %27 = tpu.matmul %3, %26, %cst_23 {dimension_numbers = #tpu.dot_dimension_numbers<[1], [0], [0], [1], [0, 0, 1, 1], [], []>} : vector<128x28xbf16>, vector<28x128xbf16>, vector<128x128xf32> -> vector<128x128xf32>
    %cst_24 = arith.constant 0.000000e+00 : f32
    %28 = vector.broadcast %cst_24 : f32 to vector<128x128xf32>
    %29 = arith.maximumf %27, %28 : vector<128x128xf32>
    %cst_25 = arith.constant dense<0.000000e+00> : vector<128xf32>
    %30 = vector.multi_reduction <add>, %29, %cst_25 [1] : vector<128x128xf32> to vector<128xf32>
    %31 = vector.shape_cast %30 : vector<128xf32> to vector<128x1xf32>
    %c0_26 = arith.constant 0 : index
    %c4 = arith.constant 4 : index
    %c0_27 = arith.constant 0 : index
    %c0_28 = arith.constant 0 : index
    %32 = vector.load %arg2[%c0_26, %c4, %c0_27, %c0_28] : memref<1x8x28x128xbf16, #tpu.memory_space<vmem>>, vector<1x1x28x128xbf16>
    %33 = vector.shape_cast %32 : vector<1x1x28x128xbf16> to vector<28x128xbf16>
    %cst_29 = arith.constant dense<0.000000e+00> : vector<128x128xf32>
    %34 = tpu.matmul %3, %33, %cst_29 {dimension_numbers = #tpu.dot_dimension_numbers<[1], [0], [0], [1], [0, 0, 1, 1], [], []>} : vector<128x28xbf16>, vector<28x128xbf16>, vector<128x128xf32> -> vector<128x128xf32>
    %cst_30 = arith.constant 0.000000e+00 : f32
    %35 = vector.broadcast %cst_30 : f32 to vector<128x128xf32>
    %36 = arith.maximumf %34, %35 : vector<128x128xf32>
    %cst_31 = arith.constant dense<0.000000e+00> : vector<128xf32>
    %37 = vector.multi_reduction <add>, %36, %cst_31 [1] : vector<128x128xf32> to vector<128xf32>
    %38 = vector.shape_cast %37 : vector<128xf32> to vector<128x1xf32>
    %c0_32 = arith.constant 0 : index
    %c5 = arith.constant 5 : index
    %c0_33 = arith.constant 0 : index
    %c0_34 = arith.constant 0 : index
    %39 = vector.load %arg2[%c0_32, %c5, %c0_33, %c0_34] : memref<1x8x28x128xbf16, #tpu.memory_space<vmem>>, vector<1x1x28x128xbf16>
    %40 = vector.shape_cast %39 : vector<1x1x28x128xbf16> to vector<28x128xbf16>
    %cst_35 = arith.constant dense<0.000000e+00> : vector<128x128xf32>
    %41 = tpu.matmul %3, %40, %cst_35 {dimension_numbers = #tpu.dot_dimension_numbers<[1], [0], [0], [1], [0, 0, 1, 1], [], []>} : vector<128x28xbf16>, vector<28x128xbf16>, vector<128x128xf32> -> vector<128x128xf32>
    %cst_36 = arith.constant 0.000000e+00 : f32
    %42 = vector.broadcast %cst_36 : f32 to vector<128x128xf32>
    %43 = arith.maximumf %41, %42 : vector<128x128xf32>
    %cst_37 = arith.constant dense<0.000000e+00> : vector<128xf32>
    %44 = vector.multi_reduction <add>, %43, %cst_37 [1] : vector<128x128xf32> to vector<128xf32>
    %45 = vector.shape_cast %44 : vector<128xf32> to vector<128x1xf32>
    %c0_38 = arith.constant 0 : index
    %c6 = arith.constant 6 : index
    %c0_39 = arith.constant 0 : index
    %c0_40 = arith.constant 0 : index
    %46 = vector.load %arg2[%c0_38, %c6, %c0_39, %c0_40] : memref<1x8x28x128xbf16, #tpu.memory_space<vmem>>, vector<1x1x28x128xbf16>
    %47 = vector.shape_cast %46 : vector<1x1x28x128xbf16> to vector<28x128xbf16>
    %cst_41 = arith.constant dense<0.000000e+00> : vector<128x128xf32>
    %48 = tpu.matmul %3, %47, %cst_41 {dimension_numbers = #tpu.dot_dimension_numbers<[1], [0], [0], [1], [0, 0, 1, 1], [], []>} : vector<128x28xbf16>, vector<28x128xbf16>, vector<128x128xf32> -> vector<128x128xf32>
    %cst_42 = arith.constant 0.000000e+00 : f32
    %49 = vector.broadcast %cst_42 : f32 to vector<128x128xf32>
    %50 = arith.maximumf %48, %49 : vector<128x128xf32>
    %cst_43 = arith.constant dense<0.000000e+00> : vector<128xf32>
    %51 = vector.multi_reduction <add>, %50, %cst_43 [1] : vector<128x128xf32> to vector<128xf32>
    %52 = vector.shape_cast %51 : vector<128xf32> to vector<128x1xf32>
    %c0_44 = arith.constant 0 : index
    %c7 = arith.constant 7 : index
    %c0_45 = arith.constant 0 : index
    %c0_46 = arith.constant 0 : index
    %53 = vector.load %arg2[%c0_44, %c7, %c0_45, %c0_46] : memref<1x8x28x128xbf16, #tpu.memory_space<vmem>>, vector<1x1x28x128xbf16>
    %54 = vector.shape_cast %53 : vector<1x1x28x128xbf16> to vector<28x128xbf16>
    %cst_47 = arith.constant dense<0.000000e+00> : vector<128x128xf32>
    %55 = tpu.matmul %3, %54, %cst_47 {dimension_numbers = #tpu.dot_dimension_numbers<[1], [0], [0], [1], [0, 0, 1, 1], [], []>} : vector<128x28xbf16>, vector<28x128xbf16>, vector<128x128xf32> -> vector<128x128xf32>
    %cst_48 = arith.constant 0.000000e+00 : f32
    %56 = vector.broadcast %cst_48 : f32 to vector<128x128xf32>
    %57 = arith.maximumf %55, %56 : vector<128x128xf32>
    %cst_49 = arith.constant dense<0.000000e+00> : vector<128xf32>
    %58 = vector.multi_reduction <add>, %57, %cst_49 [1] : vector<128x128xf32> to vector<128xf32>
    %59 = vector.shape_cast %58 : vector<128xf32> to vector<128x1xf32>
    %c0_50 = arith.constant 0 : index
    %c0_51 = arith.constant 0 : index
    %60 = vector.load %arg7[%c0_50, %c0_51] : memref<128x8xf32, #tpu.memory_space<vmem>>, vector<128x8xf32>
    %61 = tpu.concatenate %10, %17, %24, %31, %38, %45, %52, %59 in 1 : vector<128x1xf32>, vector<128x1xf32>, vector<128x1xf32>, vector<128x1xf32>, vector<128x1xf32>, vector<128x1xf32>, vector<128x1xf32>, vector<128x1xf32> -> vector<128x8xf32>
    %62 = arith.addf %60, %61 : vector<128x8xf32>
    %c0_52 = arith.constant 0 : index
    %c0_53 = arith.constant 0 : index
    %63 = vector.load %arg7[%c0_52, %c0_53] : memref<128x8xf32, #tpu.memory_space<vmem>>, vector<128x8xf32>
    tpu.vector_store %arg7[%c0_52, %c0_53], %62 {strides = array<i32>} : memref<128x8xf32, #tpu.memory_space<vmem>>, vector<128x8xf32>,
    %c1_i32 = arith.constant 1 : i32
    %64 = arith.cmpi eq, %arg1, %c1_i32 : i32
    %65 = arith.extui %64 : i1 to i32
    %c0_i32_54 = arith.constant 0 : i32
    %66 = arith.cmpi ne, %65, %c0_i32_54 : i32
    scf.if %66 {
      %c0_55 = arith.constant 0 : index
      %c0_56 = arith.constant 0 : index
      %67 = vector.load %arg7[%c0_55, %c0_56] : memref<128x8xf32, #tpu.memory_space<vmem>>, vector<128x8xf32>
      %cst_57 = arith.constant dense<0.000000e+00> : vector<128xf32>
      %68 = vector.multi_reduction <add>, %67, %cst_57 [1] : vector<128x8xf32> to vector<128xf32>
      %69 = vector.shape_cast %68 : vector<128xf32> to vector<128x1xf32>
      %cst_58 = arith.constant 4.8828125E-4 : f32
      %70 = vector.broadcast %cst_58 : f32 to vector<128x1xf32>
      %71 = arith.mulf %69, %70 : vector<128x1xf32>
      %c0_59 = arith.constant 0 : index
      %c0_60 = arith.constant 0 : index
      %72 = vector.load %arg4[%c0_59, %c0_60] : memref<8x128xf32, #tpu.memory_space<vmem>>, vector<8x128xf32>
      %cst_61 = arith.constant dense<0.000000e+00> : vector<8x1xf32>
      %73 = tpu.matmul %72, %71, %cst_61 {dimension_numbers = #tpu.dot_dimension_numbers<[1], [0], [0], [1], [0, 0, 1, 1], [], []>} : vector<8x128xf32>, vector<128x1xf32>, vector<8x1xf32> -> vector<8x1xf32>
      %c0_62 = arith.constant 0 : index
      %c0_63 = arith.constant 0 : index
      %74 = vector.load %arg5[%c0_62, %c0_63] : memref<8x1xf32, #tpu.memory_space<vmem>>, vector<8x1xf32>
      %75 = arith.addf %73, %74 : vector<8x1xf32>
      %c0_64 = arith.constant 0 : index
      %c0_65 = arith.constant 0 : index
      %c0_66 = arith.constant 0 : index
      %76 = vector.load %arg6[%c0_64, %c0_65, %c0_66] : memref<1x8x1xf32, #tpu.memory_space<vmem>>, vector<1x8x1xf32>
      %77 = vector.shape_cast %76 : vector<1x8x1xf32> to vector<8x1xf32>
      %78 = vector.shape_cast %75 : vector<8x1xf32> to vector<1x8x1xf32>
      tpu.vector_store %arg6[%c0_64, %c0_65, %c0_66], %78 {strides = array<i32>} : memref<1x8x1xf32, #tpu.memory_space<vmem>>, vector<1x8x1xf32>,
    } else {
    }
    return
  }
  func.func @transform_0(%arg0: i32, %arg1: i32) -> (i32, i32, i32, i32) {
    %c0_i32 = arith.constant 0 : i32
    %c0_i32_0 = arith.constant 0 : i32
    %c0_i32_1 = arith.constant 0 : i32
    return %arg0, %c0_i32, %c0_i32_0, %arg1 : i32, i32, i32, i32
  }
  func.func @transform_1(%arg0: i32, %arg1: i32) -> (i32, i32) {
    %c0_i32 = arith.constant 0 : i32
    %c0_i32_0 = arith.constant 0 : i32
    %c0_i32_1 = arith.constant 0 : i32
    return %c0_i32, %c0_i32_0 : i32, i32
  }
  func.func @transform_2(%arg0: i32, %arg1: i32) -> (i32, i32) {
    %c0_i32 = arith.constant 0 : i32
    %c0_i32_0 = arith.constant 0 : i32
    %c0_i32_1 = arith.constant 0 : i32
    return %c0_i32, %c0_i32_0 : i32, i32
  }
  func.func @transform_3(%arg0: i32, %arg1: i32) -> (i32, i32) {
    %c0_i32 = arith.constant 0 : i32
    %c0_i32_0 = arith.constant 0 : i32
    %c0_i32_1 = arith.constant 0 : i32
    return %c0_i32, %c0_i32_0 : i32, i32
  }
  func.func @transform_4(%arg0: i32, %arg1: i32) -> (i32, i32, i32) {
    %c0_i32 = arith.constant 0 : i32
    %c0_i32_0 = arith.constant 0 : i32
    %c0_i32_1 = arith.constant 0 : i32
    return %arg0, %c0_i32, %c0_i32_0 : i32, i32, i32
  }
}

</mosaic_0001>

<bundles_post_ra>
// kernel: tpu_custom_call.1
= control target key start
LH: loop header
LB: loop body
LE: loop exit
PB: predicated region body
PF: predicated region fallthrough
CT: control target
= control target key end

     0   :  { %s2812_s15 = smov 0   ;;  %s2814_s16 = smov 0   ;;  %s3807_s0 = inlined_call_operand.vmem [shape: bf16[2,8,28,256], index: 0, kind: input, shape index: {}]   ;;  %s3808_s1 = inlined_call_operand.vmem [shape: bf16[128,28], index: 1, kind: input, shape index: {}]   ;;  %s3809_s2 = inlined_call_operand.vmem [shape: f32[8,128], index: 2, kind: input, shape index: {}]   ;;  %s3810_s3 = inlined_call_operand.vmem [shape: f32[8,1], index: 3, kind: input, shape index: {}]   ;;  %s3811_s4 = inlined_call_operand.vmem [shape: f32[2,8,1], index: 4, kind: output, shape index: {}]  }
   0x1   :  { %s2816_s17 = smov 0   ;;  %s2818_s18 = smov 0  }
   0x2   :  { %s2820_s19 = smov 0   ;;  %s2822_s20 = smov 0  }
   0x3   :  { %s2824_s21 = smov 0  }
   0x4 LB: > { %s23_s22 = sadd.s32 1, %s2773_s19  ;;  %s26_s23 = sadd.s32 1, %s2777_s20  ;;  %s2781_s21 = sphi %s2824_s21, %s14_s21   ;;  %s2777_s20 = sphi %s2822_s20, %s3835_s20   ;;  %s2773_s19 = sphi %s2820_s19, %s3834_s19   ;;  %s2769_s18 = sphi %s2818_s18, %s3833_s18   ;;  %s2765_s17 = sphi %s2816_s17, %s3832_s17   ;;  %s2761_s16 = sphi %s2814_s16, %s3831_s16   ;;  %s2757_s15 = sphi %s2812_s15, %s3830_s15  }
   0x5   : > { %p24_p0 = scmp.ge.s32.totalorder %s23_s22, 2  ;;  %p42_p1 = scmp.ne.s32.totalorder %s2761_s16, %s2757_s15 }
   0x6   : > { %p43_p2 = scmp.eq.s32.totalorder %s2781_s21, 0  ;;  %s35_s27 = sadd.s32 1, %s2761_s16 }
   0x7   : > { %s3837_s22 = smov (%p24_p0, %s23_s22), 0  ;;  %s3839_s23 = smov (!%p24_p0, %s26_s23), %s2777_s20 }
   0x8   : > { %p44_p3 = por %p43_p2, %p42_p1  ;;  %p28_p4 = scmp.ge.s32.totalorder %s3839_s23, 2 }
   0x9   : > { %s31_s24 = ssub.s32 %s2773_s19, %s3837_s22  ;;  %p2192_p6 = scmp.ge.s32.totalorder %s2781_s21, 4 }
   0xa   : > { %s3841_s23 = smov (%p28_p4, %s3839_s23), 0 }
   0xb   : > { %s30_s25 = ssub.s32 %s2777_s20, %s3841_s23  ;;  %166 = sbr.rel (%p2192_p6) target bundleno = 45 (0x2d), region = 28 }
   0xc   : > { %s32_s26 = sor.u32 %s31_s24, %s30_s25 }
   0xd   : > { %p33_p5 = scmp.eq.s32.totalorder %s32_s26, 0 }
   0xf   : > { %s2863_s28 = scalar_select %p33_p5, %s2761_s16, %s35_s27  }
  0x12   : > { %169 = sbr.rel (!%p44_p3) target bundleno = 45 (0x2d), region = 32  ;;  %s171_s29 = sand.u32 (%p44_p3), 1, %s2761_s16  }
  0x13   : > { %s2194_s30 = sshll.u32 (%p44_p3), %s2777_s20, 6  ;;  %s2193_s5 = sshll.u32 (%p44_p3), %s171_s29, 7 }
  0x14   : > { %s175_s6 = sadd.s32 (%p44_p3), %s2773_s19, %s2194_s30  ;;  %s2877_s11 = scalar_lea.vmem (%p44_p3), [#allocation3], %s2193_s5 }
  0x15   : > { %s2195_s7 = sshll.u32 (%p44_p3), %s175_s6, 2 }
  0x16   : > { %s2872_s10 = scalar_lea.vmem (%p44_p3), %s3807_s0, %s2195_s7 }
  0x17   : > { %v193_v0 = vld [vmem:[%s2872_s10] sm:$0xf] (%p44_p3)  ;;  %v195_v1 = vld [vmem:[%s2872_s10 + $0x8] sm:$0xf] (%p44_p3)  ;;  %v197_v2 = vld [vmem:[%s2872_s10 + $0x10] sm:$0xf] (%p44_p3) }
  0x18   : > { %194 = vst [vmem:[%s2877_s11] sm:$0xf] (%p44_p3), %v193_v0  ;;  %196 = vst [vmem:[%s2877_s11 + $0x4] sm:$0xf] (%p44_p3), %v195_v1  ;;  %v199_v3 = vld [vmem:[%s2872_s10 + $0x18] sm:$0xf] (%p44_p3) }
  0x19   : > { %198 = vst [vmem:[%s2877_s11 + $0x8] sm:$0xf] %v197_v2  ;;  %v201_v4 = vld [vmem:[%s2872_s10 + $0x20] sm:$0xf]  ;;  %v203_v5 = vld [vmem:[%s2872_s10 + $0x28] sm:$0xf] }
  0x1a   : > { %200 = vst [vmem:[%s2877_s11 + $0xc] sm:$0xf] %v199_v3  ;;  %202 = vst [vmem:[%s2877_s11 + $0x10] sm:$0xf] %v201_v4  ;;  %v205_v6 = vld [vmem:[%s2872_s10 + $0x30] sm:$0xf] }
  0x1b   : > { %204 = vst [vmem:[%s2877_s11 + $0x14] sm:$0xf] %v203_v5  ;;  %v207_v7 = vld [vmem:[%s2872_s10 + $0x38] sm:$0xf]  ;;  %v209_v8 = vld [vmem:[%s2872_s10 + $0x40] sm:$0xf] }
  0x1c   : > { %206 = vst [vmem:[%s2877_s11 + $0x18] sm:$0xf] %v205_v6  ;;  %208 = vst [vmem:[%s2877_s11 + $0x1c] sm:$0xf] %v207_v7  ;;  %v211_v9 = vld [vmem:[%s2872_s10 + $0x48] sm:$0xf] }
  0x1d   : > { %210 = vst [vmem:[%s2877_s11 + $0x20] sm:$0xf] %v209_v8  ;;  %v213_v10 = vld [vmem:[%s2872_s10 + $0x50] sm:$0xf]  ;;  %v215_v11 = vld [vmem:[%s2872_s10 + $0x58] sm:$0xf] }
  0x1e   : > { %212 = vst [vmem:[%s2877_s11 + $0x24] sm:$0xf] %v211_v9  ;;  %214 = vst [vmem:[%s2877_s11 + $0x28] sm:$0xf] %v213_v10  ;;  %v217_v12 = vld [vmem:[%s2872_s10 + $0x60] sm:$0xf] }
  0x1f   : > { %216 = vst [vmem:[%s2877_s11 + $0x2c] sm:$0xf] %v215_v11  ;;  %v219_v13 = vld [vmem:[%s2872_s10 + $0x68] sm:$0xf]  ;;  %v221_v14 = vld [vmem:[%s2872_s10 + $0x70] sm:$0xf] }
  0x20   : > { %218 = vst [vmem:[%s2877_s11 + $0x30] sm:$0xf] %v217_v12  ;;  %220 = vst [vmem:[%s2877_s11 + $0x34] sm:$0xf] %v219_v13  ;;  %v223_v15 = vld [vmem:[%s2872_s10 + $0x78] sm:$0xf] }
  0x21   : > { %222 = vst [vmem:[%s2877_s11 + $0x38] sm:$0xf] %v221_v14  ;;  %v225_v16 = vld [vmem:[%s2872_s10 + $0x80] sm:$0xf]  ;;  %v227_v17 = vld [vmem:[%s2872_s10 + $0x88] sm:$0xf] }
  0x22   : > { %224 = vst [vmem:[%s2877_s11 + $0x3c] sm:$0xf] %v223_v15  ;;  %226 = vst [vmem:[%s2877_s11 + $0x40] sm:$0xf] %v225_v16  ;;  %v229_v18 = vld [vmem:[%s2872_s10 + $0x90] sm:$0xf] }
  0x23   : > { %228 = vst [vmem:[%s2877_s11 + $0x44] sm:$0xf] %v227_v17  ;;  %v231_v19 = vld [vmem:[%s2872_s10 + $0x98] sm:$0xf]  ;;  %v233_v20 = vld [vmem:[%s2872_s10 + $0xa0] sm:$0xf] }
  0x24   : > { %230 = vst [vmem:[%s2877_s11 + $0x48] sm:$0xf] %v229_v18  ;;  %232 = vst [vmem:[%s2877_s11 + $0x4c] sm:$0xf] %v231_v19  ;;  %v235_v21 = vld [vmem:[%s2872_s10 + $0xa8] sm:$0xf] }
  0x25   : > { %234 = vst [vmem:[%s2877_s11 + $0x50] sm:$0xf] %v233_v20  ;;  %v237_v22 = vld [vmem:[%s2872_s10 + $0xb0] sm:$0xf]  ;;  %v239_v23 = vld [vmem:[%s2872_s10 + $0xb8] sm:$0xf] }
  0x26   : > { %236 = vst [vmem:[%s2877_s11 + $0x54] sm:$0xf] %v235_v21  ;;  %238 = vst [vmem:[%s2877_s11 + $0x58] sm:$0xf] %v237_v22  ;;  %v241_v24 = vld [vmem:[%s2872_s10 + $0xc0] sm:$0xf] }
  0x27   : > { %240 = vst [vmem:[%s2877_s11 + $0x5c] sm:$0xf] %v239_v23  ;;  %v243_v25 = vld [vmem:[%s2872_s10 + $0xc8] sm:$0xf]  ;;  %v245_v26 = vld [vmem:[%s2872_s10 + $0xd0] sm:$0xf] }
  0x28   : > { %242 = vst [vmem:[%s2877_s11 + $0x60] sm:$0xf] %v241_v24  ;;  %244 = vst [vmem:[%s2877_s11 + $0x64] sm:$0xf] %v243_v25  ;;  %v247_v27 = vld [vmem:[%s2872_s10 + $0xd8] sm:$0xf] }
  0x29   : > { %246 = vst [vmem:[%s2877_s11 + $0x68] sm:$0xf] %v245_v26  ;;  %v249_v28 = vld [vmem:[%s2872_s10 + $0xe0] sm:$0xf]  ;;  %v251_v29 = vld [vmem:[%s2872_s10 + $0xe8] sm:$0xf] }
  0x2a   : > { %248 = vst [vmem:[%s2877_s11 + $0x6c] sm:$0xf] %v247_v27  ;;  %250 = vst [vmem:[%s2877_s11 + $0x70] sm:$0xf] %v249_v28  ;;  %v253_v30 = vld [vmem:[%s2872_s10 + $0xf0] sm:$0xf] }
  0x2b   : > { %252 = vst [vmem:[%s2877_s11 + $0x74] sm:$0xf] %v251_v29  ;;  %v255_v31 = vld [vmem:[%s2872_s10 + $0xf8] sm:$0xf]  ;;  %254 = vst [vmem:[%s2877_s11 + $0x78] sm:$0xf] %v253_v30 }
  0x2c   : > { %256 = vst [vmem:[%s2877_s11 + $0x7c] sm:$0xf] %v255_v31 }
  0x2d PF: > { %p2196_p7 = scmp.ge.s32.totalorder %s2781_s21, 1  ;;  %p342_p8 = scmp.lt.s32.totalorder %s2781_s21, 5 }
  0x2f   : > { %p343_p9 = pnand %p2196_p7, %p342_p8 }
  0x31   : > { %346 = sbr.rel (%p343_p9) target bundleno = 1066 (0x42a), region = 73 }
  0x38   : > { %s349_s12 = sand.u32 1, %s2757_s15   ;;  %p373_p10 = scmp.lt.s32.totalorder %s2769_s18, 1 }
  0x39   : > { %s2197_s13 = sshll.u32 %s349_s12, 7  ;;  %p2199_p11 = scmp.ne.s32.totalorder %s2765_s17, 0 }
  0x3a   : > { %s3843_s18 = smov (!%p373_p10, %s2769_s18), 1  ;;  %s2950_s27 = scalar_lea.vmem [#allocation3], %s2197_s13  ;;  %vm382_vm0 = vcmask (!%p2199_p11), 64512   ;;  %v2783_v32 = vmov (!%p2199_p11), 0.0  }
  0x3b   : > { %s2198_s14 = sshll.u32 %s3843_s18, 3  ;;  %381 = sbr.rel (%p2199_p11) target bundleno = 67 (0x43), region = 81  ;;  %383 = vst.msk [vmem:[#allocation2] sm:$0xff] (!%p2199_p11), %vm382_vm0, %v2783_v32  ;;  %384 = vst.msk [vmem:[#allocation2 + $0x8] sm:$0xff] (!%p2199_p11), %vm382_vm0, %v2783_v32 }
  0x3c   : > { %s2948_s26 = scalar_lea.vmem %s3811_s4, %s2198_s14  ;;  %385 = vst.msk [vmem:[#allocation2 + $0x10] sm:$0xff] (!%p2199_p11), %vm382_vm0, %v2783_v32  ;;  %386 = vst.msk [vmem:[#allocation2 + $0x18] sm:$0xff] (!%p2199_p11), %vm382_vm0, %v2783_v32 }
  0x3d   : > { %387 = vst.msk [vmem:[#allocation2 + $0x20] sm:$0xff] (!%p2199_p11), %vm382_vm0, %v2783_v32  ;;  %388 = vst.msk [vmem:[#allocation2 + $0x28] sm:$0xff] (!%p2199_p11), %vm382_vm0, %v2783_v32 }
  0x3e   : > { %389 = vst.msk [vmem:[#allocation2 + $0x30] sm:$0xff] (!%p2199_p11), %vm382_vm0, %v2783_v32  ;;  %390 = vst.msk [vmem:[#allocation2 + $0x38] sm:$0xff] (!%p2199_p11), %vm382_vm0, %v2783_v32 }
  0x3f   : > { %391 = vst.msk [vmem:[#allocation2 + $0x40] sm:$0xff] (!%p2199_p11), %vm382_vm0, %v2783_v32  ;;  %392 = vst.msk [vmem:[#allocation2 + $0x48] sm:$0xff] (!%p2199_p11), %vm382_vm0, %v2783_v32 }
  0x40   : > { %393 = vst.msk [vmem:[#allocation2 + $0x50] sm:$0xff] (!%p2199_p11), %vm382_vm0, %v2783_v32  ;;  %394 = vst.msk [vmem:[#allocation2 + $0x58] sm:$0xff] (!%p2199_p11), %vm382_vm0, %v2783_v32 }
  0x41   : > { %395 = vst.msk [vmem:[#allocation2 + $0x60] sm:$0xff] (!%p2199_p11), %vm382_vm0, %v2783_v32  ;;  %396 = vst.msk [vmem:[#allocation2 + $0x68] sm:$0xff] (!%p2199_p11), %vm382_vm0, %v2783_v32 }
  0x42   : > { %397 = vst.msk [vmem:[#allocation2 + $0x70] sm:$0xff] %vm382_vm0, %v2783_v32  ;;  %398 = vst.msk [vmem:[#allocation2 + $0x78] sm:$0xff] %vm382_vm0, %v2783_v32 }
  0x43 PF: > { %v2703_v33 = vld [vmem:[%s2950_s27] sm:$0xff]   ;;  %vm495_vm1 = vcmask 1045504   ;;  %v2704_v34 = vld [vmem:[%s2950_s27 + $0x10] sm:$0xff]   ;;  %vm470_vm2 = vcmask 228352   ;;  %v2705_v35 = vld [vmem:[%s2950_s27 + $0x8] sm:$0x3f]  }
  0x44   : > { %2416 = vmatprep.subr.bf16.mxu0 %v2703_v33  ;;  %2436 = vmatprep.subr.bf16.mxu1 %v2704_v34  ;;  %v2706_v36 = vld [vmem:[%s2950_s27 + $0x18] sm:$0x3f]   ;;  %v497_v37 = vsel %vm495_vm1, %v2705_v35, 0  ;;  %v2978_v38 = vld [vmem:[%s3808_s1] sm:$0xff]   ;;  %v2989_v40 = vld [vmem:[%s3808_s1 + $0x8] sm:$0xff]   ;;  %vm1808_vm3 = vcmask 7168  }
  0x45   : > { %2417 = vmatpush3.bf16.msra.mxu0 %v2703_v33  ;;  %2437 = vmatpush3.bf16.msra.mxu1 %v2704_v34  ;;  %v661_v39 = vsel %vm495_vm1, %v2706_v36, 0  ;;  %v2994_v41 = vld [vmem:[%s3808_s1 + $0x10] sm:$0xff]   ;;  %v2713_v42 = vld [vmem:[%s2950_s27 + $0x20] sm:$0xff]   ;;  %v3007_v44 = vld [vmem:[%s3808_s1 + $0x18] sm:$0xff]   ;;  %vm1825_vm4 = vcmask 15360   ;;  %vm1842_vm5 = vcmask 23552  }
  0x46   : > { %2635 = vmatprep.subr.msk.bf16.mxu0 %vm495_vm1, %v2705_v35  ;;  %2636 = vmatprep.subr.msk.bf16.mxu1 %vm495_vm1, %v2706_v36  ;;  %v2714_v43 = vld [vmem:[%s2950_s27 + $0x30] sm:$0xff]   ;;  %v3014_v45 = vld [vmem:[%s3808_s1 + $0x20] sm:$0xff]   ;;  %v2717_v46 = vld [vmem:[%s2950_s27 + $0x28] sm:$0x3f]   ;;  %vm1859_vm6 = vcmask 31744   ;;  %vm1876_vm7 = vcmask 39936  }
  0x47   : > { %2420 = vmatprep.mubr.msk.bf16.mxu0 %vm470_vm2, %v2978_v38  ;;  %2440 = vmatprep.mubr.msk.bf16.mxu1 %vm470_vm2, %v2978_v38  ;;  %v2718_v47 = vld [vmem:[%s2950_s27 + $0x38] sm:$0x3f]   ;;  %v825_v48 = vsel %vm495_vm1, %v2717_v46, 0  ;;  %v2719_v49 = vld [vmem:[%s2950_s27 + $0x40] sm:$0xff]   ;;  %v2720_v51 = vld [vmem:[%s2950_s27 + $0x50] sm:$0xff]   ;;  %vm1893_vm8 = vcmask 48128  }
  0x48   : > { %v989_v50 = vsel %vm495_vm1, %v2718_v47, 0  ;;  %v3035_v52 = vld [vmem:[%s3808_s1 + $0x28] sm:$0xff]   ;;  %v3040_v53 = vld [vmem:[%s3808_s1 + $0x30] sm:$0xff]   ;;  %v3053_v54 = vld [vmem:[%s3808_s1 + $0x38] sm:$0xff]   ;;  %vm1910_vm9 = vcmask 56320   ;;  %vm1943_vm10 = vcmask 64512  }
  0x49   : > { %2419 = vmatpush3.bf16.msra.mxu0 %v497_v37  ;;  %2439 = vmatpush3.bf16.msra.mxu1 %v661_v39  ;;  %v2721_v55 = vld [vmem:[%s2950_s27 + $0x48] sm:$0x3f]   ;;  %v2722_v56 = vld [vmem:[%s2950_s27 + $0x58] sm:$0x3f]   ;;  %v2723_v58 = vld [vmem:[%s2950_s27 + $0x60] sm:$0xff]   ;;  %p2316_p12 = scmp.ne.s32.totalorder %s2765_s17, 1 }
  0x4a   : > { %2456 = vmatprep.subr.bf16.mxu0 %v2713_v42  ;;  %2476 = vmatprep.subr.bf16.mxu1 %v2714_v43  ;;  %v1153_v57 = vsel %vm495_vm1, %v2721_v55, 0  ;;  %v1317_v59 = vsel %vm495_vm1, %v2722_v56, 0  ;;  %v2724_v60 = vld [vmem:[%s2950_s27 + $0x70] sm:$0xff]   ;;  %v2725_v61 = vld [vmem:[%s2950_s27 + $0x68] sm:$0x3f]   ;;  %vm2785_vm11 = vmmov (!%p2316_p12), 0  }
  0x4b   : > { %v2726_v62 = vld [vmem:[%s2950_s27 + $0x78] sm:$0x3f]   ;;  %v1481_v63 = vsel %vm495_vm1, %v2725_v61, 0 }
  0x4c   : > { %2421 = vmatmul.mubr.msk.bf16.vlgmr.msra.gmra.mrb[0].mxu0 %vm470_vm2, %v2989_v40  ;;  %2441 = vmatmul.mubr.msk.bf16.vlgmr.msra.gmra.mrb[0].mxu1 %vm470_vm2, %v2989_v40  ;;  %v1645_v0 = vsel %vm495_vm1, %v2726_v62, 0 }
  0x4d   : > { %2424 = vmatprep.mubr.msk.bf16.mxu0 %vm470_vm2, %v2994_v41  ;;  %2444 = vmatprep.mubr.msk.bf16.mxu1 %vm470_vm2, %v2994_v41 }
  0x4e   : > { %2457 = vmatpush3.bf16.msra.mxu0 %v2713_v42  ;;  %2477 = vmatpush3.bf16.msra.mxu1 %v2714_v43 }
  0x4f   : > { %2637 = vmatprep.subr.msk.bf16.mxu0 %vm495_vm1, %v2717_v46  ;;  %2638 = vmatprep.subr.msk.bf16.mxu1 %vm495_vm1, %v2718_v47 }
  0x52   : > { %2459 = vmatpush3.bf16.msra.mxu0 %v825_v48  ;;  %2479 = vmatpush3.bf16.msra.mxu1 %v989_v50 }
  0x53   : > { %2496 = vmatprep.subr.bf16.mxu0 %v2719_v49  ;;  %2516 = vmatprep.subr.bf16.mxu1 %v2720_v51 }
  0x54   : > { %2425 = vmatmul.mubr.msk.bf16.gmra.mrb[4].mxu0 %vm470_vm2, %v3007_v44  ;;  %2445 = vmatmul.mubr.msk.bf16.gmra.mrb[4].mxu1 %vm470_vm2, %v3007_v44 }
  0x55   : > { %2428 = vmatprep.mubr.msk.bf16.mxu0 %vm470_vm2, %v3014_v45  ;;  %2448 = vmatprep.mubr.msk.bf16.mxu1 %vm470_vm2, %v3014_v45 }
  0x5c   : > { %2429 = vmatmul.mubr.msk.bf16.gmra.mrb[8].mxu0 %vm470_vm2, %v3035_v52  ;;  %2449 = vmatmul.mubr.msk.bf16.gmra.mrb[8].mxu1 %vm470_vm2, %v3035_v52 }
  0x5d   : > { %2432 = vmatprep.mubr.msk.bf16.mxu0 %vm470_vm2, %v3040_v53  ;;  %2452 = vmatprep.mubr.msk.bf16.mxu1 %vm470_vm2, %v3040_v53 }
  0x64   : > { %2433 = vmatmul.mubr.msk.bf16.gmra.mrb[12].mxu0 %vm470_vm2, %v3053_v54  ;;  %2453 = vmatmul.mubr.msk.bf16.gmra.mrb[12].mxu1 %vm470_vm2, %v3053_v54 }
  0x65   : > { %2460 = vmatprep.mubr.msk.bf16.mxu0 %vm470_vm2, %v2978_v38  ;;  %2480 = vmatprep.mubr.msk.bf16.mxu1 %vm470_vm2, %v2978_v38 }
  0x6c   : > { %2461 = vmatmul.mubr.msk.bf16.vlgmr.msra.gmra.mrb[16].mxu0 %vm470_vm2, %v2989_v40  ;;  %2481 = vmatmul.mubr.msk.bf16.vlgmr.msra.gmra.mrb[16].mxu1 %vm470_vm2, %v2989_v40 }
  0x6d   : > { %2464 = vmatprep.mubr.msk.bf16.mxu0 %vm470_vm2, %v2994_v41  ;;  %2484 = vmatprep.mubr.msk.bf16.mxu1 %vm470_vm2, %v2994_v41 }
  0x6e   : > { %2497 = vmatpush3.bf16.msra.mxu0 %v2719_v49  ;;  %2517 = vmatpush3.bf16.msra.mxu1 %v2720_v51 }
  0x6f   : > { %2639 = vmatprep.subr.msk.bf16.mxu0 %vm495_vm1, %v2721_v55  ;;  %2640 = vmatprep.subr.msk.bf16.mxu1 %vm495_vm1, %v2722_v56 }
  0x72   : > { %2499 = vmatpush3.bf16.msra.mxu0 %v1153_v57  ;;  %2519 = vmatpush3.bf16.msra.mxu1 %v1317_v59 }
  0x73   : > { %2536 = vmatprep.subr.bf16.mxu0 %v2723_v58  ;;  %2556 = vmatprep.subr.bf16.mxu1 %v2724_v60 }
  0x74   : > { %2465 = vmatmul.mubr.msk.bf16.gmra.mrb[20].mxu0 %vm470_vm2, %v3007_v44  ;;  %2485 = vmatmul.mubr.msk.bf16.gmra.mrb[20].mxu1 %vm470_vm2, %v3007_v44 }
  0x75   : > { %2468 = vmatprep.mubr.msk.bf16.mxu0 %vm470_vm2, %v3014_v45  ;;  %2488 = vmatprep.mubr.msk.bf16.mxu1 %vm470_vm2, %v3014_v45 }
  0x7c   : > { %2469 = vmatmul.mubr.msk.bf16.gmra.mrb[24].mxu0 %vm470_vm2, %v3035_v52  ;;  %2489 = vmatmul.mubr.msk.bf16.gmra.mrb[24].mxu1 %vm470_vm2, %v3035_v52 }
  0x7d   : > { %2472 = vmatprep.mubr.msk.bf16.mxu0 %vm470_vm2, %v3040_v53  ;;  %2492 = vmatprep.mubr.msk.bf16.mxu1 %vm470_vm2, %v3040_v53 }
  0x84   : > { %2473 = vmatmul.mubr.msk.bf16.gmra.mrb[28].mxu0 %vm470_vm2, %v3053_v54  ;;  %2493 = vmatmul.mubr.msk.bf16.gmra.mrb[28].mxu1 %vm470_vm2, %v3053_v54 }
  0x85   : > { %2500 = vmatprep.mubr.msk.bf16.mxu0 %vm470_vm2, %v2978_v38  ;;  %2520 = vmatprep.mubr.msk.bf16.mxu1 %vm470_vm2, %v2978_v38 }
  0x8c   : > { %2501 = vmatmul.mubr.msk.bf16.vlgmr.msra.gmra.mrb[32].mxu0 %vm470_vm2, %v2989_v40  ;;  %2521 = vmatmul.mubr.msk.bf16.vlgmr.msra.gmra.mrb[32].mxu1 %vm470_vm2, %v2989_v40 }
  0x8d   : > { %2504 = vmatprep.mubr.msk.bf16.mxu0 %vm470_vm2, %v2994_v41  ;;  %2524 = vmatprep.mubr.msk.bf16.mxu1 %vm470_vm2, %v2994_v41 }
  0x8e   : > { %2537 = vmatpush3.bf16.msra.mxu0 %v2723_v58  ;;  %2557 = vmatpush3.bf16.msra.mxu1 %v2724_v60 }
  0x8f   : > { %2641 = vmatprep.subr.msk.bf16.mxu0 %vm495_vm1, %v2725_v61  ;;  %2642 = vmatprep.subr.msk.bf16.mxu1 %vm495_vm1, %v2726_v62 }
  0x92   : > { %2539 = vmatpush3.bf16.msra.mxu0 %v1481_v63  ;;  %2559 = vmatpush3.bf16.msra.mxu1 %v1645_v0 }
  0x94   : > { %2505 = vmatmul.mubr.msk.bf16.gmra.mrb[36].mxu0 %vm470_vm2, %v3007_v44  ;;  %2525 = vmatmul.mubr.msk.bf16.gmra.mrb[36].mxu1 %vm470_vm2, %v3007_v44 }
  0x95   : > { %2508 = vmatprep.mubr.msk.bf16.mxu0 %vm470_vm2, %v3014_v45  ;;  %2528 = vmatprep.mubr.msk.bf16.mxu1 %vm470_vm2, %v3014_v45 }
  0x9c   : > { %2509 = vmatmul.mubr.msk.bf16.gmra.mrb[40].mxu0 %vm470_vm2, %v3035_v52  ;;  %2529 = vmatmul.mubr.msk.bf16.gmra.mrb[40].mxu1 %vm470_vm2, %v3035_v52 }
  0x9d   : > { %2512 = vmatprep.mubr.msk.bf16.mxu0 %vm470_vm2, %v3040_v53  ;;  %2532 = vmatprep.mubr.msk.bf16.mxu1 %vm470_vm2, %v3040_v53 }
  0xa4   : > { %2513 = vmatmul.mubr.msk.bf16.gmra.mrb[44].mxu0 %vm470_vm2, %v3053_v54  ;;  %2533 = vmatmul.mubr.msk.bf16.gmra.mrb[44].mxu1 %vm470_vm2, %v3053_v54 }
  0xa5   : > { %2540 = vmatprep.mubr.msk.bf16.mxu0 %vm470_vm2, %v2978_v38  ;;  %2560 = vmatprep.mubr.msk.bf16.mxu1 %vm470_vm2, %v2978_v38 }
  0xac   : > { %2541 = vmatmul.mubr.msk.bf16.vlgmr.msra.gmra.mrb[48].mxu0 %vm470_vm2, %v2989_v40  ;;  %2561 = vmatmul.mubr.msk.bf16.vlgmr.msra.gmra.mrb[48].mxu1 %vm470_vm2, %v2989_v40 }
  0xad   : > { %2544 = vmatprep.mubr.msk.bf16.mxu0 %vm470_vm2, %v2994_v41  ;;  %2564 = vmatprep.mubr.msk.bf16.mxu1 %vm470_vm2, %v2994_v41 }
  0xb4   : > { %2545 = vmatmul.mubr.msk.bf16.gmra.mrb[52].mxu0 %vm470_vm2, %v3007_v44  ;;  %2565 = vmatmul.mubr.msk.bf16.gmra.mrb[52].mxu1 %vm470_vm2, %v3007_v44 }
  0xb5   : > { %2548 = vmatprep.mubr.msk.bf16.mxu0 %vm470_vm2, %v3014_v45  ;;  %2568 = vmatprep.mubr.msk.bf16.mxu1 %vm470_vm2, %v3014_v45 }
  0xbc   : > { %2549 = vmatmul.mubr.msk.bf16.gmra.mrb[56].mxu0 %vm470_vm2, %v3035_v52  ;;  %2569 = vmatmul.mubr.msk.bf16.gmra.mrb[56].mxu1 %vm470_vm2, %v3035_v52 }
  0xbd   : > { %2552 = vmatprep.mubr.msk.bf16.mxu0 %vm470_vm2, %v3040_v53  ;;  %2572 = vmatprep.mubr.msk.bf16.mxu1 %vm470_vm2, %v3040_v53 }
  0xc4   : > { %2553 = vmatmul.mubr.msk.bf16.gmra.mrb[60].mxu0 %vm470_vm2, %v3053_v54  ;;  %2573 = vmatmul.mubr.msk.bf16.gmra.mrb[60].mxu1 %vm470_vm2, %v3053_v54 }
 0x11f   : > { %v2422_v1 = vpop.f32.mrb[0].mxu0  ;;  %v2442_v2 = vpop.f32.mrb[0].mxu1 }
 0x120   : > { %v533_v3 = vpop.f32.mrb[1].mxu0  ;;  %v598_v4 = vmax.f32 %v2422_v1, 0.0  ;;  %v697_v5 = vpop.f32.mrb[1].mxu1  ;;  %v762_v7 = vmax.f32 %v2442_v2, 0.0 }
 0x121   : > { %v2423_v6 = vpop.f32.mrb[2].mxu0  ;;  %v2443_v8 = vpop.f32.mrb[2].mxu1  ;;  %v596_v12 = vmax.f32 %v533_v3, 0.0  ;;  %v760_v17 = vmax.f32 %v697_v5, 0.0 }
 0x122   : > { %616 = vadd.xlane.f32.xlu1 %v598_v4  ;;  %v536_v9 = vpop.f32.mrb[3].mxu0  ;;  %780 = vadd.xlane.f32.xlu0 %v762_v7  ;;  %v700_v10 = vpop.f32.mrb[3].mxu1  ;;  %v599_v11 = vmax.f32 %v2423_v6, 0.0  ;;  %v763_v14 = vmax.f32 %v2443_v8, 0.0 }
 0x123   : > { %v761_v23 = vmax.f32 %v700_v10, 0.0  ;;  %v597_v24 = vmax.f32 %v536_v9, 0.0 }
 0x126   : > { %618 = vadd.xlane.f32.xlu1 %v599_v11  ;;  %612 = vadd.xlane.f32.xlu0 %v596_v12 }
 0x127   : > { %v2426_v13 = vpop.f32.mrb[4].mxu0  ;;  %v2446_v16 = vpop.f32.mrb[4].mxu1 }
 0x128   : > { %v549_v15 = vpop.f32.mrb[5].mxu0  ;;  %v713_v19 = vpop.f32.mrb[5].mxu1  ;;  %v602_v29 = vmax.f32 %v2426_v13, 0.0  ;;  %v766_v36 = vmax.f32 %v2446_v16, 0.0 }
 0x129   : > { %v2427_v18 = vpop.f32.mrb[6].mxu0  ;;  %v2447_v21 = vpop.f32.mrb[6].mxu1  ;;  %v600_v41 = vmax.f32 %v549_v15, 0.0  ;;  %v764_v48 = vmax.f32 %v713_v19, 0.0 }
 0x12a   : > { %782 = vadd.xlane.f32.xlu1 %v763_v14  ;;  %v552_v20 = vpop.f32.mrb[7].mxu0  ;;  %776 = vadd.xlane.f32.xlu0 %v760_v17  ;;  %v716_v22 = vpop.f32.mrb[7].mxu1  ;;  %v603_v26 = vmax.f32 %v2427_v18, 0.0  ;;  %v767_v35 = vmax.f32 %v2447_v21, 0.0 }
 0x12b   : > { %v601_v38 = vmax.f32 %v552_v20, 0.0  ;;  %v765_v47 = vmax.f32 %v716_v22, 0.0 }
 0x12e   : > { %778 = vadd.xlane.f32.xlu1 %v761_v23  ;;  %614 = vadd.xlane.f32.xlu0 %v597_v24 }
 0x12f   : > { %v2430_v25 = vpop.f32.mrb[8].mxu0  ;;  %v2450_v28 = vpop.f32.mrb[8].mxu1 }
 0x130   : > { %v565_v27 = vpop.f32.mrb[9].mxu0  ;;  %v729_v31 = vpop.f32.mrb[9].mxu1  ;;  %v606_v53 = vmax.f32 %v2430_v25, 0.0  ;;  %v770_v60 = vmax.f32 %v2450_v28, 0.0 }
 0x131   : > { %v2431_v30 = vpop.f32.mrb[10].mxu0  ;;  %v2451_v33 = vpop.f32.mrb[10].mxu1  ;;  %v604_v1 = vmax.f32 %v565_v27, 0.0  ;;  %v768_v8 = vmax.f32 %v729_v31, 0.0 }
 0x132   : > { %626 = vadd.xlane.f32.xlu1 %v603_v26  ;;  %v568_v32 = vpop.f32.mrb[11].mxu0  ;;  %624 = vadd.xlane.f32.xlu0 %v602_v29  ;;  %v732_v34 = vpop.f32.mrb[11].mxu1  ;;  %v607_v50 = vmax.f32 %v2431_v30, 0.0  ;;  %v771_v59 = vmax.f32 %v2451_v33, 0.0 }
 0x133   : > { %v605_v62 = vmax.f32 %v568_v32, 0.0  ;;  %v769_v7 = vmax.f32 %v732_v34, 0.0 }
 0x136   : > { %790 = vadd.xlane.f32.xlu1 %v767_v35  ;;  %788 = vadd.xlane.f32.xlu0 %v766_v36 }
 0x137   : > { %v2434_v37 = vpop.f32.mrb[12].mxu0  ;;  %v2454_v40 = vpop.f32.mrb[12].mxu1 }
 0x138   : > { %v3169_v39 = vpop.f32.mrb[13].mxu0  ;;  %v3171_v43 = vpop.f32.mrb[13].mxu1  ;;  %v610_v13 = vmax.f32 %v2434_v37, 0.0  ;;  %v774_v20 = vmax.f32 %v2454_v40, 0.0 }
 0x139   : > { %v2435_v42 = vpop.f32.mrb[14].mxu0  ;;  %v2455_v45 = vpop.f32.mrb[14].mxu1  ;;  %v608_v25 = vmax.f32 %v3169_v39, 0.0  ;;  %v772_v32 = vmax.f32 %v3171_v43, 0.0 }
 0x13a   : > { %622 = vadd.xlane.f32.xlu1 %v601_v38  ;;  %v3173_v44 = vpop.f32.mrb[15].mxu0  ;;  %620 = vadd.xlane.f32.xlu0 %v600_v41  ;;  %v3175_v46 = vpop.f32.mrb[15].mxu1  ;;  %v611_v10 = vmax.f32 %v2435_v42, 0.0  ;;  %v775_v19 = vmax.f32 %v2455_v45, 0.0 }
 0x13b   : > { %v609_v22 = vmax.f32 %v3173_v44, 0.0  ;;  %v773_v31 = vmax.f32 %v3175_v46, 0.0 }
 0x13e   : > { %786 = vadd.xlane.f32.xlu1 %v765_v47  ;;  %784 = vadd.xlane.f32.xlu0 %v764_v48 }
 0x13f   : > { %v3177_v49 = vpop.f32.mrb[16].mxu0  ;;  %v3181_v52 = vpop.f32.mrb[16].mxu1 }
 0x140   : > { %v3179_v51 = vpop.f32.mrb[17].mxu0  ;;  %v3185_v55 = vpop.f32.mrb[17].mxu1  ;;  %v926_v37 = vmax.f32 %v3177_v49, 0.0  ;;  %v1090_v44 = vmax.f32 %v3181_v52, 0.0 }
 0x141   : > { %v3183_v54 = vpop.f32.mrb[18].mxu0  ;;  %v3189_v57 = vpop.f32.mrb[18].mxu1  ;;  %v924_v49 = vmax.f32 %v3179_v51, 0.0 }
 0x142   : > { %634 = vadd.xlane.f32.xlu1 %v607_v50  ;;  %v3187_v56 = vpop.f32.mrb[19].mxu0  ;;  %632 = vadd.xlane.f32.xlu0 %v606_v53  ;;  %v3191_v58 = vpop.f32.mrb[19].mxu1  ;;  %v927_v34 = vmax.f32 %v3183_v54, 0.0  ;;  %v1091_v43 = vmax.f32 %v3189_v57, 0.0 }
 0x143   : > { %v925_v46 = vmax.f32 %v3187_v56, 0.0  ;;  %v1089_v56 = vmax.f32 %v3191_v58, 0.0 }
 0x146   : > { %798 = vadd.xlane.f32.xlu1 %v771_v59  ;;  %796 = vadd.xlane.f32.xlu0 %v770_v60  ;;  %v1088_v59 = vmax.f32 %v3185_v55, 0.0 }
 0x147   : > { %v3193_v61 = vpop.f32.mrb[20].mxu0  ;;  %v3197_v0 = vpop.f32.mrb[20].mxu1 }
 0x148   : > { %v3195_v63 = vpop.f32.mrb[21].mxu0  ;;  %v3201_v3 = vpop.f32.mrb[21].mxu1 }
 0x149   : > { %v3199_v2 = vpop.f32.mrb[22].mxu0  ;;  %v3205_v5 = vpop.f32.mrb[22].mxu1 }
 0x14a   : > { %630 = vadd.xlane.f32.xlu1 %v605_v62  ;;  %v3203_v4 = vpop.f32.mrb[23].mxu0  ;;  %628 = vadd.xlane.f32.xlu0 %v604_v1  ;;  %v3207_v6 = vpop.f32.mrb[23].mxu1  ;;  %v931_v51 = vmax.f32 %v3199_v2, 0.0  ;;  %v1095_v2 = vmax.f32 %v3205_v5, 0.0 }
 0x14e   : > { %794 = vadd.xlane.f32.xlu1 %v769_v7  ;;  %792 = vadd.xlane.f32.xlu0 %v768_v8  ;;  %v930_v7 = vmax.f32 %v3193_v61, 0.0  ;;  %v929_v61 = vmax.f32 %v3203_v4, 0.0  ;;  %v1093_v4 = vmax.f32 %v3207_v6, 0.0 }
 0x14f   : > { %v3209_v9 = vpop.f32.mrb[24].mxu0  ;;  %v3213_v12 = vpop.f32.mrb[24].mxu1 }
 0x150   : > { %v3211_v11 = vpop.f32.mrb[25].mxu0  ;;  %v3217_v15 = vpop.f32.mrb[25].mxu1 }
 0x151   : > { %v3215_v14 = vpop.f32.mrb[26].mxu0  ;;  %v3221_v17 = vpop.f32.mrb[26].mxu1 }
 0x152   : > { %642 = vadd.xlane.f32.xlu1 %v611_v10  ;;  %v3219_v16 = vpop.f32.mrb[27].mxu0  ;;  %640 = vadd.xlane.f32.xlu0 %v610_v13  ;;  %v3223_v18 = vpop.f32.mrb[27].mxu1 }
 0x156   : > { %806 = vadd.xlane.f32.xlu1 %v775_v19  ;;  %804 = vadd.xlane.f32.xlu0 %v774_v20  ;;  %v1094_v19 = vmax.f32 %v3197_v0, 0.0 }
 0x157   : > { %v3225_v21 = vpop.f32.mrb[28].mxu0  ;;  %v3230_v24 = vpop.f32.mrb[28].mxu1 }
 0x158   : > { %v3228_v23 = vpop.f32.mrb[29].mxu0  ;;  %v3235_v27 = vpop.f32.mrb[29].mxu1 }
 0x159   : > { %v3233_v26 = vpop.f32.mrb[30].mxu0  ;;  %v3239_v29 = vpop.f32.mrb[30].mxu1 }
 0x15a   : > { %638 = vadd.xlane.f32.xlu1 %v609_v22  ;;  %v3237_v28 = vpop.f32.mrb[31].mxu0  ;;  %636 = vadd.xlane.f32.xlu0 %v608_v25  ;;  %v3241_v30 = vpop.f32.mrb[31].mxu1 }
 0x15e   : > { %802 = vadd.xlane.f32.xlu1 %v773_v31  ;;  %800 = vadd.xlane.f32.xlu0 %v772_v32  ;;  %v928_v31 = vmax.f32 %v3195_v63, 0.0  ;;  %v935_v63 = vmax.f32 %v3215_v14, 0.0  ;;  %v1099_v14 = vmax.f32 %v3221_v17, 0.0 }
 0x15f   : > { %v3245_v33 = vpop.f32.mrb[32].mxu0  ;;  %v3250_v36 = vpop.f32.mrb[32].mxu1 }
 0x160   : > { %v3248_v35 = vpop.f32.mrb[33].mxu0  ;;  %v3255_v39 = vpop.f32.mrb[33].mxu1 }
 0x161   : > { %v3253_v38 = vpop.f32.mrb[34].mxu0  ;;  %v3259_v41 = vpop.f32.mrb[34].mxu1 }
 0x162   : > { %946 = vadd.xlane.f32.xlu1 %v927_v34  ;;  %v3257_v40 = vpop.f32.mrb[35].mxu0  ;;  %944 = vadd.xlane.f32.xlu0 %v926_v37  ;;  %v3261_v42 = vpop.f32.mrb[35].mxu1 }
 0x166   : > { %1110 = vadd.xlane.f32.xlu1 %v1091_v43  ;;  %1108 = vadd.xlane.f32.xlu0 %v1090_v44  ;;  %v1092_v43 = vmax.f32 %v3201_v3, 0.0 }
 0x167   : > { %v3265_v45 = vpop.f32.mrb[36].mxu0  ;;  %v3270_v48 = vpop.f32.mrb[36].mxu1 }
 0x168   : > { %v3268_v47 = vpop.f32.mrb[37].mxu0  ;;  %v3275_v53 = vpop.f32.mrb[37].mxu1 }
 0x169   : > { %v3273_v50 = vpop.f32.mrb[38].mxu0  ;;  %v3279_v52 = vpop.f32.mrb[38].mxu1 }
 0x16a   : > { %942 = vadd.xlane.f32.xlu1 %v925_v46  ;;  %v3277_v54 = vpop.f32.mrb[39].mxu0  ;;  %940 = vadd.xlane.f32.xlu0 %v924_v49  ;;  %v3281_v57 = vpop.f32.mrb[39].mxu1 }
 0x16e   : > { %1106 = vadd.xlane.f32.xlu1 %v1089_v56  ;;  %1104 = vadd.xlane.f32.xlu0 %v1088_v59  ;;  %v934_v56 = vmax.f32 %v3209_v9, 0.0  ;;  %v933_v9 = vmax.f32 %v3219_v16, 0.0  ;;  %v1097_v16 = vmax.f32 %v3223_v18, 0.0 }
 0x16f   : > { %v3285_v60 = vpop.f32.mrb[40].mxu0  ;;  %v3290_v1 = vpop.f32.mrb[40].mxu1 }
 0x170   : > { %v3288_v62 = vpop.f32.mrb[41].mxu0  ;;  %v3295_v10 = vpop.f32.mrb[41].mxu1 }
 0x171   : > { %v3293_v8 = vpop.f32.mrb[42].mxu0  ;;  %v3299_v55 = vpop.f32.mrb[42].mxu1 }
 0x172   : > { %954 = vadd.xlane.f32.xlu1 %v931_v51  ;;  %v3297_v58 = vpop.f32.mrb[43].mxu0  ;;  %952 = vadd.xlane.f32.xlu0 %v930_v7  ;;  %v3301_v13 = vpop.f32.mrb[43].mxu1 }
 0x176   : > { %1118 = vadd.xlane.f32.xlu1 %v1095_v2  ;;  %1116 = vadd.xlane.f32.xlu0 %v1094_v19  ;;  %v1098_v2 = vmax.f32 %v3213_v12, 0.0 }
 0x177   : > { %v3305_v20 = vpop.f32.mrb[44].mxu0  ;;  %v3310_v25 = vpop.f32.mrb[44].mxu1 }
 0x178   : > { %v3308_v22 = vpop.f32.mrb[45].mxu0  ;;  %v3315_v34 = vpop.f32.mrb[45].mxu1 }
 0x179   : > { %v3313_v32 = vpop.f32.mrb[46].mxu0  ;;  %v3319_v0 = vpop.f32.mrb[46].mxu1 }
 0x17a   : > { %950 = vadd.xlane.f32.xlu1 %v929_v61  ;;  %v3317_v5 = vpop.f32.mrb[47].mxu0  ;;  %948 = vadd.xlane.f32.xlu0 %v928_v31  ;;  %v3321_v37 = vpop.f32.mrb[47].mxu1 }
 0x17e   : > { %1114 = vadd.xlane.f32.xlu1 %v1093_v4  ;;  %1112 = vadd.xlane.f32.xlu0 %v1092_v43  ;;  %v932_v4 = vmax.f32 %v3211_v11, 0.0  ;;  %v939_v11 = vmax.f32 %v3233_v26, 0.0  ;;  %v1103_v26 = vmax.f32 %v3239_v29, 0.0 }
 0x17f   : > { %v3325_v44 = vpop.f32.mrb[48].mxu0  ;;  %v3330_v49 = vpop.f32.mrb[48].mxu1 }
 0x180   : > { %v3328_v46 = vpop.f32.mrb[49].mxu0  ;;  %v3335_v51 = vpop.f32.mrb[49].mxu1 }
 0x181   : > { %v3333_v59 = vpop.f32.mrb[50].mxu0  ;;  %v3339_v3 = vpop.f32.mrb[50].mxu1 }
 0x182   : > { %962 = vadd.xlane.f32.xlu1 %v935_v63  ;;  %v3337_v6 = vpop.f32.mrb[51].mxu0  ;;  %960 = vadd.xlane.f32.xlu0 %v934_v56  ;;  %v3341_v7 = vpop.f32.mrb[51].mxu1 }
 0x186   : > { %1126 = vadd.xlane.f32.xlu1 %v1099_v14  ;;  %1124 = vadd.xlane.f32.xlu0 %v1098_v2  ;;  %v1096_v14 = vmax.f32 %v3217_v15, 0.0 }
 0x187   : > { %v3345_v19 = vpop.f32.mrb[52].mxu0  ;;  %v3350_v31 = vpop.f32.mrb[52].mxu1 }
 0x188   : > { %v3348_v61 = vpop.f32.mrb[53].mxu0  ;;  %v3355_v63 = vpop.f32.mrb[53].mxu1 }
 0x189   : > { %3812 = vst [vmem:[#allocation4_spill] sm:$0xff] %v3348_v61  ;;  %v3353_v43 = vpop.f32.mrb[54].mxu0  ;;  %3813 = vst [vmem:[#allocation5_spill] sm:$0xff] %v3355_v63  ;;  %v3359_v12 = vpop.f32.mrb[54].mxu1  ;;  %v938_v63 = vmax.f32 %v3225_v21, 0.0  ;;  %v937_v21 = vmax.f32 %v3237_v28, 0.0 }
 0x18a   : > { %958 = vadd.xlane.f32.xlu1 %v933_v9  ;;  %v3357_v17 = vpop.f32.mrb[55].mxu0  ;;  %956 = vadd.xlane.f32.xlu0 %v932_v4  ;;  %v3361_v56 = vpop.f32.mrb[55].mxu1  ;;  %v1101_v28 = vmax.f32 %v3241_v30, 0.0  ;;  %v1252_v30 = vmax.f32 %v3248_v35, 0.0 }
 0x18b   : > { %3814 = vst [vmem:[#allocation6_spill] sm:$0xff] %v3357_v17 }
 0x18e   : > { %1122 = vadd.xlane.f32.xlu1 %v1097_v16  ;;  %1120 = vadd.xlane.f32.xlu0 %v1096_v14  ;;  %v1102_v14 = vmax.f32 %v3230_v24, 0.0 }
 0x18f   : > { %v3365_v2 = vpop.f32.mrb[56].mxu0  ;;  %v3370_v9 = vpop.f32.mrb[56].mxu1 }
 0x190   : > { %v3368_v61 = vpop.f32.mrb[57].mxu0  ;;  %3816 = vst [vmem:[#allocation8_spill] sm:$0xff] %v3370_v9  ;;  %v3375_v4 = vpop.f32.mrb[57].mxu1 }
 0x191   : > { %3815 = vst [vmem:[#allocation7_spill] sm:$0xff] %v3368_v61  ;;  %v3373_v17 = vpop.f32.mrb[58].mxu0  ;;  %3817 = vst [vmem:[#allocation9_spill] sm:$0xff] %v3375_v4  ;;  %v3379_v15 = vpop.f32.mrb[58].mxu1  ;;  %v936_v4 = vmax.f32 %v3228_v23, 0.0  ;;  %v1255_v23 = vmax.f32 %v3253_v38, 0.0 }
 0x192   : > { %970 = vadd.xlane.f32.xlu1 %v939_v11  ;;  %v3377_v18 = vpop.f32.mrb[59].mxu0  ;;  %968 = vadd.xlane.f32.xlu0 %v938_v63  ;;  %v3381_v16 = vpop.f32.mrb[59].mxu1  ;;  %v1416_v38 = vmax.f32 %v3255_v39, 0.0  ;;  %v1422_v39 = vmax.f32 %v3270_v48, 0.0 }
 0x193   : > { %3818 = vst [vmem:[#allocation10_spill] sm:$0xff] %v3377_v18 }
 0x196   : > { %1134 = vadd.xlane.f32.xlu1 %v1103_v26  ;;  %1132 = vadd.xlane.f32.xlu0 %v1102_v14  ;;  %v1100_v14 = vmax.f32 %v3235_v27, 0.0  ;;  %v1417_v27 = vmax.f32 %v3261_v42, 0.0 }
 0x197   : > { %v3385_v61 = vpop.f32.mrb[60].mxu0  ;;  %v3390_v11 = vpop.f32.mrb[60].mxu1 }
 0x198   : > { %v3388_v9 = vpop.f32.mrb[61].mxu0  ;;  %3819 = vst [vmem:[#allocation11_spill] sm:$0xff] %v3390_v11  ;;  %v3395_v63 = vpop.f32.mrb[61].mxu1  ;;  %v1254_v11 = vmax.f32 %v3245_v33, 0.0 }
 0x199   : > { %v3393_v18 = vpop.f32.mrb[62].mxu0  ;;  %3820 = vst [vmem:[#allocation12_spill] sm:$0xff] %v3395_v63  ;;  %v3399_v24 = vpop.f32.mrb[62].mxu1  ;;  %v1418_v63 = vmax.f32 %v3250_v36, 0.0  ;;  %v1258_v36 = vmax.f32 %v3265_v45, 0.0  ;;  %v1256_v45 = vmax.f32 %v3268_v47, 0.0 }
 0x19a   : > { %966 = vadd.xlane.f32.xlu1 %v937_v21  ;;  %v3397_v29 = vpop.f32.mrb[63].mxu0  ;;  %964 = vadd.xlane.f32.xlu0 %v936_v4  ;;  %v3401_v26 = vpop.f32.mrb[63].mxu1  ;;  %v1419_v21 = vmax.f32 %v3259_v41, 0.0  ;;  %v1253_v4 = vmax.f32 %v3257_v40, 0.0  ;;  %v1259_v41 = vmax.f32 %v3273_v50, 0.0  ;;  %v1423_v40 = vmax.f32 %v3279_v52, 0.0 }
 0x19e   : > { %1130 = vadd.xlane.f32.xlu1 %v1101_v28  ;;  %1128 = vadd.xlane.f32.xlu0 %v1100_v14  ;;  %v1257_v14 = vmax.f32 %v3277_v54, 0.0 }
 0x1a2   : > { %1274 = vadd.xlane.f32.xlu1 %v1255_v23  ;;  %1272 = vadd.xlane.f32.xlu0 %v1254_v11 }
 0x1a6   : > { %1438 = vadd.xlane.f32.xlu1 %v1419_v21  ;;  %1436 = vadd.xlane.f32.xlu0 %v1418_v63 }
 0x1aa   : > { %1270 = vadd.xlane.f32.xlu1 %v1253_v4  ;;  %1268 = vadd.xlane.f32.xlu0 %v1252_v30  ;;  %v1421_v4 = vmax.f32 %v3281_v57, 0.0  ;;  %v1420_v30 = vmax.f32 %v3275_v53, 0.0  ;;  %v1426_v53 = vmax.f32 %v3290_v1, 0.0  ;;  %v1424_v1 = vmax.f32 %v3295_v10, 0.0 }
 0x1ab   : > { %v1430_v10 = vmax.f32 %v3310_v25, 0.0  ;;  %v1428_v25 = vmax.f32 %v3315_v34, 0.0  ;;  %v1746_v34 = vmax.f32 %v3330_v49, 0.0  ;;  %v1744_v49 = vmax.f32 %v3335_v51, 0.0 }
 0x1ae   : > { %1434 = vadd.xlane.f32.xlu1 %v1417_v27  ;;  %1432 = vadd.xlane.f32.xlu0 %v1416_v38  ;;  %v1263_v38 = vmax.f32 %v3293_v8, 0.0 }
 0x1af   : > { %v617_v33 = vpop.xlane.xlu1 %616  ;;  %v781_v11 = vpop.xlane.xlu0 %780 }
 0x1b0   : > { %v3416_v63 = vsel %vm1808_vm3, %v617_v33, %v781_v11  ;;  %v1262_v33 = vmax.f32 %v3285_v60, 0.0  ;;  %v1427_v11 = vmax.f32 %v3299_v55, 0.0 }
 0x1b2   : > { %1282 = vadd.xlane.f32.xlu1 %v1259_v41  ;;  %1280 = vadd.xlane.f32.xlu0 %v1258_v36 }
 0x1b3   : > { %v619_v35 = vpop.xlane.xlu1 %618  ;;  %v613_v42 = vpop.xlane.xlu0 %612 }
 0x1b6   : > { %1446 = vadd.xlane.f32.xlu1 %v1423_v40  ;;  %1444 = vadd.xlane.f32.xlu0 %v1422_v39  ;;  %v1261_v40 = vmax.f32 %v3297_v58, 0.0  ;;  %v1425_v39 = vmax.f32 %v3301_v13, 0.0 }
 0x1b7   : > { %v783_v28 = vpop.xlane.xlu1 %782  ;;  %v777_v50 = vpop.xlane.xlu0 %776 }
 0x1b8   : > { %v3422_v23 = vsel %vm1808_vm3, %v619_v35, %v783_v28  ;;  %v3426_v21 = vsel %vm1808_vm3, %v613_v42, %v777_v50  ;;  %v1260_v42 = vmax.f32 %v3288_v62, 0.0 }
 0x1ba   : > { %1278 = vadd.xlane.f32.xlu1 %v1257_v14  ;;  %1276 = vadd.xlane.f32.xlu0 %v1256_v45  ;;  %v1267_v45 = vmax.f32 %v3313_v32, 0.0 }
 0x1bb   : > { %v779_v52 = vpop.xlane.xlu1 %778  ;;  %v615_v48 = vpop.xlane.xlu0 %614 }
 0x1bc   : > { %v3431_v27 = vsel %vm1808_vm3, %v615_v48, %v779_v52  ;;  %v1266_v52 = vmax.f32 %v3305_v20, 0.0 }
 0x1be   : > { %1442 = vadd.xlane.f32.xlu1 %v1421_v4  ;;  %1440 = vadd.xlane.f32.xlu0 %v1420_v30  ;;  %v1431_v4 = vmax.f32 %v3319_v0, 0.0 }
 0x1bf   : > { %v627_v54 = vpop.xlane.xlu1 %626  ;;  %v625_v47 = vpop.xlane.xlu0 %624 }
 0x1c2   : > { %1290 = vadd.xlane.f32.xlu1 %v1263_v38  ;;  %1288 = vadd.xlane.f32.xlu0 %v1262_v33  ;;  %v1265_v38 = vmax.f32 %v3317_v5, 0.0  ;;  %v1429_v33 = vmax.f32 %v3321_v37, 0.0 }
 0x1c3   : > { %v791_v41 = vpop.xlane.xlu1 %790  ;;  %v789_v57 = vpop.xlane.xlu0 %788 }
 0x1c4   : > { %v3437_v36 = vsel %vm1808_vm3, %v627_v54, %v791_v41  ;;  %v3441_v35 = vsel %vm1808_vm3, %v625_v47, %v789_v57  ;;  %v1264_v47 = vmax.f32 %v3308_v22, 0.0 }
 0x1c6   : > { %1454 = vadd.xlane.f32.xlu1 %v1427_v11  ;;  %1452 = vadd.xlane.f32.xlu0 %v1426_v53  ;;  %v1583_v53 = vmax.f32 %v3333_v59, 0.0 }
 0x1c7   : > { %v623_v8 = vpop.xlane.xlu1 %622  ;;  %v621_v60 = vpop.xlane.xlu0 %620 }
 0x1ca   : > { %1286 = vadd.xlane.f32.xlu1 %v1261_v40  ;;  %1284 = vadd.xlane.f32.xlu0 %v1260_v42  ;;  %v1747_v40 = vmax.f32 %v3339_v3, 0.0 }
 0x1cb   : > { %v787_v55 = vpop.xlane.xlu1 %786  ;;  %v785_v28 = vpop.xlane.xlu0 %784 }
 0x1cc   : > { %v3447_v14 = vsel %vm1808_vm3, %v623_v8, %v787_v55  ;;  %v3451_v50 = vsel %vm1808_vm3, %v621_v60, %v785_v28  ;;  %v1582_v8 = vmax.f32 %v3325_v44, 0.0  ;;  %v1580_v28 = vmax.f32 %v3328_v46, 0.0 }
 0x1cd   : > { %v1587_v46 = vmax.f32 %v3353_v43, 0.0  ;;  %v1750_v43 = vmax.f32 %v3350_v31, 0.0 }
 0x1ce   : > { %1450 = vadd.xlane.f32.xlu1 %v1425_v39  ;;  %1448 = vadd.xlane.f32.xlu0 %v1424_v1  ;;  %v1581_v39 = vmax.f32 %v3337_v6, 0.0  ;;  %v1745_v1 = vmax.f32 %v3341_v7, 0.0  ;;  %v1586_v7 = vmax.f32 %v3345_v19, 0.0 }
 0x1cf   : > { %v635_v58 = vpop.xlane.xlu1 %634  ;;  %v633_v62 = vpop.xlane.xlu0 %632 }
 0x1d2   : > { %1298 = vadd.xlane.f32.xlu1 %v1267_v45  ;;  %1296 = vadd.xlane.f32.xlu0 %v1266_v52 }
 0x1d3   : > { %v799_v13 = vpop.xlane.xlu1 %798  ;;  %v797_v48 = vpop.xlane.xlu0 %796 }
 0x1d4   : > { %v3457_v30 = vsel %vm1808_vm3, %v635_v58, %v799_v13  ;;  %v3461_v54 = vsel %vm1808_vm3, %v633_v62, %v797_v48  ;;  %v1751_v48 = vmax.f32 %v3359_v12, 0.0 }
 0x1d6   : > { %1462 = vadd.xlane.f32.xlu1 %v1431_v4  ;;  %1460 = vadd.xlane.f32.xlu0 %v1430_v10 }
 0x1d7   : > { %v631_v32 = vpop.xlane.xlu1 %630  ;;  %v629_v20 = vpop.xlane.xlu0 %628 }
 0x1da   : > { %1294 = vadd.xlane.f32.xlu1 %v1265_v38  ;;  %1292 = vadd.xlane.f32.xlu0 %v1264_v47 }
 0x1db   : > { %v795_v0 = vpop.xlane.xlu1 %794  ;;  %v793_v41 = vpop.xlane.xlu0 %792 }
 0x1dc   : > { %v3467_v11 = vsel %vm1808_vm3, %v631_v32, %v795_v0  ;;  %v3471_v57 = vsel %vm1808_vm3, %v629_v20, %v793_v41  ;;  %v3822_v0 = vld [vmem:[#allocation4_spill] sm:$0xff]  ;;  %v1749_v41 = vmax.f32 %v3361_v56, 0.0  ;;  %v1590_v56 = vmax.f32 %v3365_v2, 0.0 }
 0x1dd   : > { %v1584_v12 = vmax.f32 %v3822_v0, 0.0 }
 0x1de   : > { %1458 = vadd.xlane.f32.xlu1 %v1429_v33  ;;  %1456 = vadd.xlane.f32.xlu0 %v1428_v25 }
 0x1df   : > { %v643_v5 = vpop.xlane.xlu1 %642  ;;  %v641_v22 = vpop.xlane.xlu0 %640 }
 0x1e2   : > { %1602 = vadd.xlane.f32.xlu1 %v1583_v53  ;;  %1600 = vadd.xlane.f32.xlu0 %v1582_v8  ;;  %v3823_v53 = vld [vmem:[#allocation5_spill] sm:$0xff] }
 0x1e3   : > { %v807_v37 = vpop.xlane.xlu1 %806  ;;  %v805_v60 = vpop.xlane.xlu0 %804 }
 0x1e4   : > { %v3477_v42 = vsel %vm1808_vm3, %v643_v5, %v807_v37  ;;  %v3481_v55 = vsel %vm1808_vm3, %v641_v22, %v805_v60  ;;  %v1748_v22 = vmax.f32 %v3823_v53, 0.0  ;;  %v1591_v37 = vmax.f32 %v3373_v17, 0.0 }
 0x1e6   : > { %1766 = vadd.xlane.f32.xlu1 %v1747_v40  ;;  %1764 = vadd.xlane.f32.xlu0 %v1746_v34 }
 0x1e7   : > { %v639_v59 = vpop.xlane.xlu1 %638  ;;  %v637_v44 = vpop.xlane.xlu0 %636 }
 0x1ea   : > { %1598 = vadd.xlane.f32.xlu1 %v1581_v39  ;;  %1596 = vadd.xlane.f32.xlu0 %v1580_v28  ;;  %v3824_v28 = vld [vmem:[#allocation8_spill] sm:$0xff] }
 0x1eb   : > { %v803_v3 = vpop.xlane.xlu1 %802  ;;  %v801_v58 = vpop.xlane.xlu0 %800  ;;  %v1754_v17 = vmax.f32 %v3824_v28, 0.0 }
 0x1ec   : > { %v3487_v45 = vsel %vm1808_vm3, %v639_v59, %v803_v3  ;;  %v3491_v62 = vsel %vm1808_vm3, %v637_v44, %v801_v58  ;;  %v1755_v59 = vmax.f32 %v3379_v15, 0.0 }
 0x1ee   : > { %1762 = vadd.xlane.f32.xlu1 %v1745_v1  ;;  %1760 = vadd.xlane.f32.xlu0 %v1744_v49  ;;  %v3826_v49 = vld [vmem:[#allocation7_spill] sm:$0xff] }
 0x1ef   : > { %v947_v6 = vpop.xlane.xlu1 %946  ;;  %v945_v52 = vpop.xlane.xlu0 %944  ;;  %v1588_v15 = vmax.f32 %v3826_v49, 0.0 }
 0x1f0   : > { %v1829_v13 = vsel %vm1825_vm4, %v3422_v23, %v947_v6  ;;  %v1828_v4 = vsel %vm1825_vm4, %v3416_v63, %v945_v52  ;;  %v3821_v23 = vld [vmem:[#allocation6_spill] sm:$0xff]  ;;  %v1753_v52 = vmax.f32 %v3381_v16, 0.0  ;;  %v1594_v16 = vmax.f32 %v3385_v61, 0.0 }
 0x1f1   : > { %v1585_v63 = vmax.f32 %v3821_v23, 0.0 }
 0x1f2   : > { %1610 = vadd.xlane.f32.xlu1 %v1587_v46  ;;  %1608 = vadd.xlane.f32.xlu0 %v1586_v7 }
 0x1f3   : > { %v1111_v51 = vpop.xlane.xlu1 %1110  ;;  %v1109_v10 = vpop.xlane.xlu0 %1108 }
 0x1f4   : > { %v3501_v32 = vsel %vm1842_vm5, %v1829_v13, %v1111_v51  ;;  %v3505_v38 = vsel %vm1842_vm5, %v1828_v4, %v1109_v10  ;;  %v3827_v4 = vld [vmem:[#allocation9_spill] sm:$0xff]  ;;  %v1595_v10 = vmax.f32 %v3393_v18, 0.0  ;;  %v1592_v18 = vmax.f32 %v3388_v9, 0.0 }
 0x1f5   : > { %v1752_v51 = vmax.f32 %v3827_v4, 0.0 }
 0x1f6   : > { %1774 = vadd.xlane.f32.xlu1 %v1751_v48  ;;  %1772 = vadd.xlane.f32.xlu0 %v1750_v43 }
 0x1f7   : > { %v943_v19 = vpop.xlane.xlu1 %942  ;;  %v941_v20 = vpop.xlane.xlu0 %940 }
 0x1f8   : > { %v1827_v47 = vsel %vm1825_vm4, %v3431_v27, %v943_v19  ;;  %v1826_v33 = vsel %vm1825_vm4, %v3426_v21, %v941_v20 }
 0x1fa   : > { %1606 = vadd.xlane.f32.xlu1 %v1585_v63  ;;  %1604 = vadd.xlane.f32.xlu0 %v1584_v12  ;;  %v1593_v63 = vmax.f32 %v3397_v29, 0.0 }
 0x1fb   : > { %v1107_v31 = vpop.xlane.xlu1 %1106  ;;  %v1105_v25 = vpop.xlane.xlu0 %1104 }
 0x1fc   : > { %v3515_v5 = vsel %vm1842_vm5, %v1827_v47, %v1107_v31  ;;  %v3519_v8 = vsel %vm1842_vm5, %v1826_v33, %v1105_v25  ;;  %v3828_v33 = vld [vmem:[#allocation12_spill] sm:$0xff] }
 0x1fd   : > { %v1756_v29 = vmax.f32 %v3828_v33, 0.0 }
 0x1fe   : > { %1770 = vadd.xlane.f32.xlu1 %v1749_v41  ;;  %1768 = vadd.xlane.f32.xlu0 %v1748_v22  ;;  %v1759_v41 = vmax.f32 %v3399_v24, 0.0  ;;  %v3829_v22 = vld [vmem:[#allocation11_spill] sm:$0xff] }
 0x1ff   : > { %v955_v27 = vpop.xlane.xlu1 %954  ;;  %v953_v21 = vpop.xlane.xlu0 %952 }
 0x200   : > { %v1833_v40 = vsel %vm1825_vm4, %v3437_v36, %v955_v27  ;;  %v1832_v60 = vsel %vm1825_vm4, %v3441_v35, %v953_v21  ;;  %v3825_v36 = vld [vmem:[#allocation10_spill] sm:$0xff]  ;;  %v1758_v27 = vmax.f32 %v3829_v22, 0.0 }
 0x201   : > { %v1589_v1 = vmax.f32 %v3825_v36, 0.0 }
 0x202   : > { %1618 = vadd.xlane.f32.xlu1 %v1591_v37  ;;  %1616 = vadd.xlane.f32.xlu0 %v1590_v56 }
 0x203   : > { %v1119_v34 = vpop.xlane.xlu1 %1118  ;;  %v1117_v39 = vpop.xlane.xlu0 %1116 }
 0x204   : > { %v3529_v44 = vsel %vm1842_vm5, %v1833_v40, %v1119_v34  ;;  %v3533_v3 = vsel %vm1842_vm5, %v1832_v60, %v1117_v39 }
 0x206   : > { %1782 = vadd.xlane.f32.xlu1 %v1755_v59  ;;  %1780 = vadd.xlane.f32.xlu0 %v1754_v17 }
 0x207   : > { %v951_v2 = vpop.xlane.xlu1 %950  ;;  %v949_v35 = vpop.xlane.xlu0 %948 }
 0x208   : > { %v1831_v58 = vsel %vm1825_vm4, %v3447_v14, %v951_v2  ;;  %v1830_v6 = vsel %vm1825_vm4, %v3451_v50, %v949_v35 }
 0x20a   : > { %1614 = vadd.xlane.f32.xlu1 %v1589_v1  ;;  %1612 = vadd.xlane.f32.xlu0 %v1588_v15 }
 0x20b   : > { %v1115_v46 = vpop.xlane.xlu1 %1114  ;;  %v1113_v13 = vpop.xlane.xlu0 %1112 }
 0x20c   : > { %v3543_v7 = vsel %vm1842_vm5, %v1831_v58, %v1115_v46  ;;  %v3547_v48 = vsel %vm1842_vm5, %v1830_v6, %v1113_v13 }
 0x20e   : > { %1778 = vadd.xlane.f32.xlu1 %v1753_v52  ;;  %1776 = vadd.xlane.f32.xlu0 %v1752_v51 }
 0x20f   : > { %v963_v14 = vpop.xlane.xlu1 %962  ;;  %v961_v50 = vpop.xlane.xlu0 %960 }
 0x210   : > { %v1837_v43 = vsel %vm1825_vm4, %v3457_v30, %v963_v14  ;;  %v1836_v19 = vsel %vm1825_vm4, %v3461_v54, %v961_v50  ;;  %v1757_v30 = vmax.f32 %v3401_v26, 0.0 }
 0x212   : > { %1626 = vadd.xlane.f32.xlu1 %v1595_v10  ;;  %1624 = vadd.xlane.f32.xlu0 %v1594_v16 }
 0x213   : > { %v1127_v23 = vpop.xlane.xlu1 %1126  ;;  %v1125_v20 = vpop.xlane.xlu0 %1124 }
 0x214   : > { %v3557_v47 = vsel %vm1842_vm5, %v1837_v43, %v1127_v23  ;;  %v3561_v0 = vsel %vm1842_vm5, %v1836_v19, %v1125_v20 }
 0x216   : > { %1622 = vadd.xlane.f32.xlu1 %v1593_v63  ;;  %1620 = vadd.xlane.f32.xlu0 %v1592_v18 }
 0x217   : > { %v959_v61 = vpop.xlane.xlu1 %958  ;;  %v957_v54 = vpop.xlane.xlu0 %956 }
 0x218   : > { %v1835_v12 = vsel %vm1825_vm4, %v3467_v11, %v959_v61  ;;  %v1834_v31 = vsel %vm1825_vm4, %v3471_v57, %v957_v54 }
 0x21a   : > { %1786 = vadd.xlane.f32.xlu1 %v1757_v30  ;;  %1784 = vadd.xlane.f32.xlu0 %v1756_v29 }
 0x21b   : > { %v1123_v9 = vpop.xlane.xlu1 %1122  ;;  %v1121_v25 = vpop.xlane.xlu0 %1120 }
 0x21c   : > { %v1852_v53 = vsel %vm1842_vm5, %v1835_v12, %v1123_v9  ;;  %v1851_v26 = vsel %vm1842_vm5, %v1834_v31, %v1121_v25 }
 0x21e   : > { %1790 = vadd.xlane.f32.xlu1 %v1759_v41  ;;  %1788 = vadd.xlane.f32.xlu0 %v1758_v27 }
 0x21f   : > { %v971_v11 = vpop.xlane.xlu1 %970  ;;  %v969_v37 = vpop.xlane.xlu0 %968 }
 0x220   : > { %v1841_v21 = vsel %vm1825_vm4, %v3477_v42, %v971_v11  ;;  %v1840_v57 = vsel %vm1825_vm4, %v3481_v55, %v969_v37 }
 0x223   : > { %v1135_v40 = vpop.xlane.xlu1 %1134  ;;  %v1133_v56 = vpop.xlane.xlu0 %1132 }
 0x224   : > { %v1858_v24 = vsel %vm1842_vm5, %v1841_v21, %v1135_v40  ;;  %v1857_v60 = vsel %vm1842_vm5, %v1840_v57, %v1133_v56  ;;  %v1795_v57 = vld [vmem:[#allocation2 + $0x18] sm:$0xff] }
 0x227   : > { %v967_v34 = vpop.xlane.xlu1 %966  ;;  %v965_v59 = vpop.xlane.xlu0 %964 }
 0x228   : > { %v1839_v39 = vsel %vm1825_vm4, %v3487_v45, %v967_v34  ;;  %v1838_v28 = vsel %vm1825_vm4, %v3491_v62, %v965_v59 }
 0x22b   : > { %v1131_v17 = vpop.xlane.xlu1 %1130  ;;  %v1129_v2 = vpop.xlane.xlu0 %1128 }
 0x22c   : > { %v3584_v42 = vsel %vm1842_vm5, %v1839_v39, %v1131_v17  ;;  %v3587_v55 = vsel %vm1842_vm5, %v1838_v28, %v1129_v2 }
 0x22f   : > { %v1275_v36 = vpop.xlane.xlu1 %1274  ;;  %v1273_v1 = vpop.xlane.xlu0 %1272 }
 0x230   : > { %v1863_v35 = vsel %vm1859_vm6, %v3501_v32, %v1275_v36  ;;  %v1862_v45 = vsel %vm1859_vm6, %v3505_v38, %v1273_v1 }
 0x233   : > { %v1439_v58 = vpop.xlane.xlu1 %1438  ;;  %v1437_v49 = vpop.xlane.xlu0 %1436 }
 0x234   : > { %v1880_v21 = vsel %vm1876_vm7, %v1863_v35, %v1439_v58  ;;  %v1879_v40 = vsel %vm1876_vm7, %v1862_v45, %v1437_v49  ;;  %v1793_v45 = vld [vmem:[#allocation2 + $0x8] sm:$0xff] }
 0x237   : > { %v1271_v62 = vpop.xlane.xlu1 %1270  ;;  %v1269_v15 = vpop.xlane.xlu0 %1268 }
 0x238   : > { %v3595_v6 = vsel %vm1859_vm6, %v3515_v5, %v1271_v62  ;;  %v3599_v46 = vsel %vm1859_vm6, %v3519_v8, %v1269_v15  ;;  %v1792_v62 = vld [vmem:[#allocation2] sm:$0xff] }
 0x23b   : > { %v1435_v52 = vpop.xlane.xlu1 %1434  ;;  %v1433_v13 = vpop.xlane.xlu0 %1432 }
 0x23c   : > { %v1878_v35 = vsel %vm1876_vm7, %v3595_v6, %v1435_v52  ;;  %v1877_v58 = vsel %vm1876_vm7, %v3599_v46, %v1433_v13  ;;  %v1799_v13 = vld [vmem:[#allocation2 + $0x38] sm:$0xff] }
 0x23f   : > { %v1283_v4 = vpop.xlane.xlu1 %1282  ;;  %v1281_v51 = vpop.xlane.xlu0 %1280 }
 0x240   : > { %v3603_v32 = vsel %vm1859_vm6, %v3529_v44, %v1283_v4  ;;  %v3607_v38 = vsel %vm1859_vm6, %v3533_v3, %v1281_v51 }
 0x243   : > { %v3609_v14 = vpop.xlane.xlu1 %1446  ;;  %v3611_v5 = vpop.xlane.xlu0 %1444 }
 0x244   : > { %v1884_v46 = vsel %vm1876_vm7, %v3603_v32, %v3609_v14 }
 0x247   : > { %v1279_v10 = vpop.xlane.xlu1 %1278  ;;  %v1277_v50 = vpop.xlane.xlu0 %1276 }
 0x248   : > { %v3615_v8 = vsel %vm1859_vm6, %v3543_v7, %v1279_v10  ;;  %v3619_v43 = vsel %vm1859_vm6, %v3547_v48, %v1277_v50 }
 0x24b   : > { %v3621_v44 = vpop.xlane.xlu1 %1442  ;;  %v3623_v16 = vpop.xlane.xlu0 %1440 }
 0x24f   : > { %v1291_v3 = vpop.xlane.xlu1 %1290  ;;  %v1289_v19 = vpop.xlane.xlu0 %1288 }
 0x250   : > { %v3627_v23 = vsel %vm1859_vm6, %v3557_v47, %v1291_v3  ;;  %v3631_v63 = vsel %vm1859_vm6, %v3561_v0, %v1289_v19 }
 0x253   : > { %v3633_v7 = vpop.xlane.xlu1 %1454  ;;  %v3635_v20 = vpop.xlane.xlu0 %1452 }
 0x257   : > { %v1287_v48 = vpop.xlane.xlu1 %1286  ;;  %v1285_v18 = vpop.xlane.xlu0 %1284 }
 0x258   : > { %v3638_v61 = vsel %vm1859_vm6, %v1852_v53, %v1287_v48  ;;  %v3641_v30 = vsel %vm1859_vm6, %v1851_v26, %v1285_v18  ;;  %v1883_v48 = vsel %vm1876_vm7, %v3607_v38, %v3611_v5  ;;  %v1882_v38 = vsel %vm1876_vm7, %v3615_v8, %v3621_v44  ;;  %v1797_v5 = vld [vmem:[#allocation2 + $0x28] sm:$0xff] }
 0x25b   : > { %v3643_v54 = vpop.xlane.xlu1 %1450  ;;  %v3645_v47 = vpop.xlane.xlu0 %1448 }
 0x25f   : > { %v1299_v12 = vpop.xlane.xlu1 %1298  ;;  %v1297_v33 = vpop.xlane.xlu0 %1296 }
 0x260   : > { %v1875_v0 = vsel %vm1859_vm6, %v1858_v24, %v1299_v12  ;;  %v1874_v29 = vsel %vm1859_vm6, %v1857_v60, %v1297_v33  ;;  %v1794_v24 = vld [vmem:[#allocation2 + $0x10] sm:$0xff] }
 0x261   : > { %v1798_v12 = vld [vmem:[#allocation2 + $0x30] sm:$0xff] }
 0x263   : > { %v1463_v31 = vpop.xlane.xlu1 %1462  ;;  %v1461_v9 = vpop.xlane.xlu0 %1460 }
 0x264   : > { %v3650_v41 = vsel %vm1876_vm7, %v1875_v0, %v1463_v31  ;;  %v3653_v25 = vsel %vm1876_vm7, %v1874_v29, %v1461_v9 }
 0x267   : > { %v3655_v53 = vpop.xlane.xlu1 %1294  ;;  %v3657_v22 = vpop.xlane.xlu0 %1292 }
 0x26b   : > { %v3659_v27 = vpop.xlane.xlu1 %1458  ;;  %v3661_v26 = vpop.xlane.xlu0 %1456 }
 0x26f   : > { %v1603_v11 = vpop.xlane.xlu1 %1602  ;;  %v1601_v37 = vpop.xlane.xlu0 %1600 }
 0x270   : > { %v1897_v56 = vsel %vm1893_vm8, %v1880_v21, %v1603_v11  ;;  %v1896_v34 = vsel %vm1893_vm8, %v1879_v40, %v1601_v37  ;;  %v1881_v21 = vsel %vm1876_vm7, %v3619_v43, %v3623_v16  ;;  %v1796_v40 = vld [vmem:[#allocation2 + $0x20] sm:$0xff]  ;;  %v1888_v43 = vsel %vm1876_vm7, %v3627_v23, %v3633_v7  ;;  %v1803_v16 = vld [vmem:[#allocation2 + $0x58] sm:$0xff] }
 0x273   : > { %v1767_v60 = vpop.xlane.xlu1 %1766  ;;  %v1765_v59 = vpop.xlane.xlu0 %1764 }
 0x274   : > { %v1914_v39 = vsel %vm1910_vm9, %v1897_v56, %v1767_v60  ;;  %v1913_v28 = vsel %vm1910_vm9, %v1896_v34, %v1765_v59 }
 0x275   : > { %v1930_v17 = vadd.f32 %v1914_v39, %v1795_v57  ;;  %v1929_v2 = vadd.f32 %v1913_v28, %v1794_v24 }
 0x277   : > { %1947 = vst.msk [vmem:[#allocation2 + $0x18] sm:$0xff] %vm1943_vm10, %v1930_v17  ;;  %v1599_v36 = vpop.xlane.xlu1 %1598  ;;  %1946 = vst.msk [vmem:[#allocation2 + $0x10] sm:$0xff] %vm1943_vm10, %v1929_v2  ;;  %v1597_v1 = vpop.xlane.xlu0 %1596  ;;  %v1887_v17 = vsel %vm1876_vm7, %v3631_v63, %v3635_v20  ;;  %v1886_v63 = vsel %vm1876_vm7, %v3638_v61, %v3643_v54  ;;  %v1801_v20 = vld [vmem:[#allocation2 + $0x48] sm:$0xff] }
 0x278   : > { %v1895_v49 = vsel %vm1893_vm8, %v1878_v35, %v1599_v36  ;;  %v1894_v4 = vsel %vm1893_vm8, %v1877_v58, %v1597_v1  ;;  %v1802_v36 = vld [vmem:[#allocation2 + $0x50] sm:$0xff] }
 0x27b   : > { %v1763_v15 = vpop.xlane.xlu1 %1762  ;;  %v1761_v51 = vpop.xlane.xlu0 %1760 }
 0x27c   : > { %v1912_v10 = vsel %vm1910_vm9, %v1895_v49, %v1763_v15  ;;  %v1911_v50 = vsel %vm1910_vm9, %v1894_v4, %v1761_v51  ;;  %v1885_v4 = vsel %vm1876_vm7, %v3641_v30, %v3645_v47 }
 0x27d   : > { %v1928_v3 = vadd.f32 %v1912_v10, %v1793_v45  ;;  %v1927_v19 = vadd.f32 %v1911_v50, %v1792_v62  ;;  %v1800_v10 = vld [vmem:[#allocation2 + $0x40] sm:$0xff] }
 0x27f   : > { %1945 = vst.msk [vmem:[#allocation2 + $0x8] sm:$0xff] %vm1943_vm10, %v1928_v3  ;;  %v1611_v6 = vpop.xlane.xlu1 %1610  ;;  %1944 = vst.msk [vmem:[#allocation2] sm:$0xff] %vm1943_vm10, %v1927_v19  ;;  %v1609_v52 = vpop.xlane.xlu0 %1608 }
 0x280   : > { %v1901_v18 = vsel %vm1893_vm8, %v1884_v46, %v1611_v6  ;;  %v1900_v0 = vsel %vm1893_vm8, %v1883_v48, %v1609_v52  ;;  %v1873_v48 = vsel %vm1859_vm6, %v3584_v42, %v3655_v53 }
 0x283   : > { %v1775_v33 = vpop.xlane.xlu1 %1774  ;;  %v1773_v29 = vpop.xlane.xlu0 %1772 }
 0x284   : > { %v1918_v31 = vsel %vm1910_vm9, %v1901_v18, %v1775_v33  ;;  %v1917_v9 = vsel %vm1910_vm9, %v1900_v0, %v1773_v29  ;;  %v1872_v18 = vsel %vm1859_vm6, %v3587_v55, %v3657_v22  ;;  %v1805_v33 = vld [vmem:[#allocation2 + $0x68] sm:$0xff]  ;;  %v1807_v22 = vld [vmem:[#allocation2 + $0x78] sm:$0xff] }
 0x285   : > { %v1934_v11 = vadd.f32 %v1918_v31, %v1799_v13  ;;  %v1933_v37 = vadd.f32 %v1917_v9, %v1798_v12  ;;  %v1890_v12 = vsel %vm1876_vm7, %v1873_v48, %v3659_v27  ;;  %v1889_v0 = vsel %vm1876_vm7, %v1872_v18, %v3661_v26  ;;  %v1804_v31 = vld [vmem:[#allocation2 + $0x60] sm:$0xff]  ;;  %v1806_v26 = vld [vmem:[#allocation2 + $0x70] sm:$0xff] }
 0x287   : > { %1951 = vst.msk [vmem:[#allocation2 + $0x38] sm:$0xff] %vm1943_vm10, %v1934_v11  ;;  %v1607_v32 = vpop.xlane.xlu1 %1606  ;;  %1950 = vst.msk [vmem:[#allocation2 + $0x30] sm:$0xff] %vm1943_vm10, %v1933_v37  ;;  %v1605_v14 = vpop.xlane.xlu0 %1604 }
 0x288   : > { %v1899_v57 = vsel %vm1893_vm8, %v1882_v38, %v1607_v32  ;;  %v1898_v24 = vsel %vm1893_vm8, %v1881_v21, %v1605_v14 }
 0x28b   : > { %v1771_v56 = vpop.xlane.xlu1 %1770  ;;  %v1769_v60 = vpop.xlane.xlu0 %1768 }
 0x28c   : > { %v1916_v34 = vsel %vm1910_vm9, %v1899_v57, %v1771_v56  ;;  %v1915_v59 = vsel %vm1910_vm9, %v1898_v24, %v1769_v60  ;;  %v1964_v24 = vld [vmem:[#allocation2] sm:$0xff] (!%p2316_p12)  ;;  %v1967_v60 = vld [vmem:[#allocation2 + $0x18] sm:$0xff] (!%p2316_p12) }
 0x28d   : > { %v1932_v39 = vadd.f32 %v1916_v34, %v1797_v5  ;;  %v1931_v28 = vadd.f32 %v1915_v59, %v1796_v40  ;;  %v1980_v34 = vsel (!%p2316_p12), %vm1943_vm10, %v1964_v24, 0.0  ;;  %v1965_v59 = vld [vmem:[#allocation2 + $0x8] sm:$0xff] (!%p2316_p12) }
 0x28e   : > { %1981 = vadd.xlane.f32.xlu0 (!%p2316_p12), %v1980_v34 }
 0x28f   : > { %1949 = vst.msk [vmem:[#allocation2 + $0x28] sm:$0xff] %vm1943_vm10, %v1932_v39  ;;  %v1619_v8 = vpop.xlane.xlu1 %1618  ;;  %1948 = vst.msk [vmem:[#allocation2 + $0x20] sm:$0xff] %vm1943_vm10, %v1931_v28  ;;  %v1617_v44 = vpop.xlane.xlu0 %1616  ;;  %v1989_v39 = vsel (!%p2316_p12), %vm1943_vm10, %v1967_v60, 0.0  ;;  %v1983_v28 = vsel (!%p2316_p12), %vm1943_vm10, %v1965_v59, 0.0 }
 0x290   : > { %v1905_v2 = vsel %vm1893_vm8, %v1888_v43, %v1619_v8  ;;  %v1904_v35 = vsel %vm1893_vm8, %v1887_v17, %v1617_v44  ;;  %v1971_v17 = vld [vmem:[#allocation2 + $0x38] sm:$0xff] (!%p2316_p12) }
 0x292   : > { %1984 = vadd.xlane.f32.xlu0 (!%p2316_p12), %v1983_v28 }
 0x293   : > { %v1783_v1 = vpop.xlane.xlu1 %1782  ;;  %v1781_v45 = vpop.xlane.xlu0 %1780 }
 0x294   : > { %v1922_v58 = vsel %vm1910_vm9, %v1905_v2, %v1783_v1  ;;  %v1921_v49 = vsel %vm1910_vm9, %v1904_v35, %v1781_v45  ;;  %v1970_v2 = vld [vmem:[#allocation2 + $0x30] sm:$0xff] (!%p2316_p12) }
 0x295   : > { %v1938_v62 = vadd.f32 %v1922_v58, %v1803_v16  ;;  %v1937_v15 = vadd.f32 %v1921_v49, %v1802_v36  ;;  %v2001_v36 = vsel (!%p2316_p12), %vm1943_vm10, %v1971_v17, 0.0  ;;  %v1998_v1 = vsel (!%p2316_p12), %vm1943_vm10, %v1970_v2, 0.0 }
 0x296   : > { %v1969_v8 = vld [vmem:[#allocation2 + $0x28] sm:$0xff] (!%p2316_p12)  ;;  %v1968_v44 = vld [vmem:[#allocation2 + $0x20] sm:$0xff] (!%p2316_p12) }
 0x297   : > { %1955 = vst.msk [vmem:[#allocation2 + $0x58] sm:$0xff] %vm1943_vm10, %v1938_v62  ;;  %v1615_v23 = vpop.xlane.xlu1 %1614  ;;  %1954 = vst.msk [vmem:[#allocation2 + $0x50] sm:$0xff] %vm1943_vm10, %v1937_v15  ;;  %v1613_v7 = vpop.xlane.xlu0 %1612  ;;  %v1995_v43 = vsel (!%p2316_p12), %vm1943_vm10, %v1969_v8, 0.0  ;;  %v1992_v16 = vsel (!%p2316_p12), %vm1943_vm10, %v1968_v44, 0.0 }
 0x298   : > { %v1903_v51 = vsel %vm1893_vm8, %v1886_v63, %v1615_v23  ;;  %v1902_v3 = vsel %vm1893_vm8, %v1885_v4, %v1613_v7  ;;  %1993 = vadd.xlane.f32.xlu0 (!%p2316_p12), %v1992_v16  ;;  %v2045_v16 = vld [vmem:[%s3810_s3] sm:$0xff] (!%p2316_p12) }
 0x29b   : > { %v1779_v50 = vpop.xlane.xlu1 %1778  ;;  %v1777_v19 = vpop.xlane.xlu0 %1776 }
 0x29c   : > { %v1920_v6 = vsel %vm1910_vm9, %v1903_v51, %v1779_v50  ;;  %v1919_v52 = vsel %vm1910_vm9, %v1902_v3, %v1777_v19  ;;  %1999 = vadd.xlane.f32.xlu0 (!%p2316_p12), %v1998_v1 }
 0x29d   : > { %v1936_v46 = vadd.f32 %v1920_v6, %v1801_v20  ;;  %v1935_v13 = vadd.f32 %v1919_v52, %v1800_v10  ;;  %v2784_v10 = vmov (!%p2316_p12), 0.0|0.0   ;;  %v2786_v52 = vmov (!%p2316_p12), 0.0  }
 0x29e   : > { %v1975_v62 = vld [vmem:[#allocation2 + $0x58] sm:$0xff] (!%p2316_p12)  ;;  %v1974_v15 = vld [vmem:[#allocation2 + $0x50] sm:$0xff] (!%p2316_p12)  ;;  %2611 = vmatprep.subr.bf16.mxu0 (!%p2316_p12), %v2784_v10  ;;  %2608 = vmatprep.mubr.msk.f32.mxu0 (!%p2316_p12), %vm2785_vm11, %v2786_v52 }
 0x29f   : > { %1953 = vst.msk [vmem:[#allocation2 + $0x48] sm:$0xff] %vm1943_vm10, %v1936_v46  ;;  %v1627_v61 = vpop.xlane.xlu1 %1626  ;;  %1952 = vst.msk [vmem:[#allocation2 + $0x40] sm:$0xff] %vm1943_vm10, %v1935_v13  ;;  %v1625_v54 = vpop.xlane.xlu0 %1624  ;;  %v2013_v23 = vsel (!%p2316_p12), %vm1943_vm10, %v1975_v62, 0.0  ;;  %v2010_v7 = vsel (!%p2316_p12), %vm1943_vm10, %v1974_v15, 0.0 }
 0x2a0   : > { %v1909_v27 = vsel %vm1893_vm8, %v3650_v41, %v1627_v61  ;;  %v1908_v38 = vsel %vm1893_vm8, %v3653_v25, %v1625_v54  ;;  %v1966_v41 = vld [vmem:[#allocation2 + $0x10] sm:$0xff] (!%p2316_p12) }
 0x2a1   : > { %v1986_v25 = vsel (!%p2316_p12), %vm1943_vm10, %v1966_v41, 0.0 }
 0x2a2   : > { %1987 = vadd.xlane.f32.xlu1 (!%p2316_p12), %v1986_v25 }
 0x2a3   : > { %v1623_v30 = vpop.xlane.xlu1 %1622  ;;  %v1621_v47 = vpop.xlane.xlu0 %1620 }
 0x2a4   : > { %v1907_v29 = vsel %vm1893_vm8, %v1890_v12, %v1623_v30  ;;  %v1906_v11 = vsel %vm1893_vm8, %v1889_v0, %v1621_v47 }
 0x2a6   : > { %1990 = vadd.xlane.f32.xlu1 (!%p2316_p12), %v1989_v39  ;;  %v1973_v35 = vld [vmem:[#allocation2 + $0x48] sm:$0xff] (!%p2316_p12)  ;;  %v1972_v45 = vld [vmem:[#allocation2 + $0x40] sm:$0xff] (!%p2316_p12) }
 0x2a7   : > { %v1787_v9 = vpop.xlane.xlu1 %1786  ;;  %v1785_v37 = vpop.xlane.xlu0 %1784  ;;  %v2007_v58 = vsel (!%p2316_p12), %vm1943_vm10, %v1973_v35, 0.0  ;;  %v2004_v49 = vsel (!%p2316_p12), %vm1943_vm10, %v1972_v45, 0.0 }
 0x2a8   : > { %v1924_v42 = vsel %vm1910_vm9, %v1907_v29, %v1787_v9  ;;  %v1923_v53 = vsel %vm1910_vm9, %v1906_v11, %v1785_v37  ;;  %2005 = vadd.xlane.f32.xlu0 (!%p2316_p12), %v2004_v49 }
 0x2a9   : > { %v1940_v32 = vadd.f32 %v1924_v42, %v1805_v33  ;;  %v1939_v55 = vadd.f32 %v1923_v53, %v1804_v31  ;;  %1963 = sbr.rel (%p2316_p12) target bundleno = 1066 (0x42a), region = 85 }
 0x2aa   : > { %1996 = vadd.xlane.f32.xlu1 (!%p2316_p12), %v1995_v43  ;;  %v2044_v43 = vld [vmem:[%s3809_s2] sm:$0xff] (!%p2316_p12) }
 0x2ab   : > { %1957 = vst.msk [vmem:[#allocation2 + $0x68] sm:$0xff] %vm1943_vm10, %v1940_v32  ;;  %v1791_v14 = vpop.xlane.xlu1 %1790  ;;  %1956 = vst.msk [vmem:[#allocation2 + $0x60] sm:$0xff] %vm1943_vm10, %v1939_v55  ;;  %v1789_v5 = vpop.xlane.xlu0 %1788 }
 0x2ac   : > { %v1926_v21 = vsel %vm1910_vm9, %v1909_v27, %v1791_v14  ;;  %v1925_v57 = vsel %vm1910_vm9, %v1908_v38, %v1789_v5  ;;  %2011 = vadd.xlane.f32.xlu0 (!%p2316_p12), %v2010_v7 }
 0x2ad   : > { %v1942_v40 = vadd.f32 %v1926_v21, %v1807_v22  ;;  %v1941_v56 = vadd.f32 %v1925_v57, %v1806_v26 }
 0x2ae   : > { %2002 = vadd.xlane.f32.xlu1 (!%p2316_p12), %v2001_v36 }
 0x2af   : > { %1959 = vst.msk [vmem:[#allocation2 + $0x78] sm:$0xff] %vm1943_vm10, %v1942_v40  ;;  %1958 = vst.msk [vmem:[#allocation2 + $0x70] sm:$0xff] %vm1943_vm10, %v1941_v56 }
 0x2b2   : > { %2008 = vadd.xlane.f32.xlu1 %v2007_v58  ;;  %v1977_v63 = vld [vmem:[#allocation2 + $0x68] sm:$0xff]  ;;  %v1976_v20 = vld [vmem:[#allocation2 + $0x60] sm:$0xff] }
 0x2b3   : > { %v2019_v4 = vsel %vm1943_vm10, %v1977_v63, 0.0  ;;  %v2016_v51 = vsel %vm1943_vm10, %v1976_v20, 0.0 }
 0x2b4   : > { %2017 = vadd.xlane.f32.xlu0 %v2016_v51 }
 0x2b6   : > { %2014 = vadd.xlane.f32.xlu1 %v2013_v23  ;;  %v1979_v50 = vld [vmem:[#allocation2 + $0x78] sm:$0xff]  ;;  %v1978_v3 = vld [vmem:[#allocation2 + $0x70] sm:$0xff] }
 0x2b7   : > { %v2025_v19 = vsel %vm1943_vm10, %v1979_v50, 0.0  ;;  %v2022_v6 = vsel %vm1943_vm10, %v1978_v3, 0.0 }
 0x2b8   : > { %2023 = vadd.xlane.f32.xlu0 %v2022_v6 }
 0x2ba   : > { %2020 = vadd.xlane.f32.xlu1 %v2019_v4 }
 0x2be   : > { %2026 = vadd.xlane.f32.xlu1 %v2025_v19 }
 0x31b   : > { %v1982_v13 = vpop.xlane.xlu0 %1981 }
 0x31c   : > { %v2028_v30 = vmul.f32 0.00048828125, %v1982_v13 }
 0x31f   : > { %v1985_v54 = vpop.xlane.xlu0 %1984 }
 0x320   : > { %v2029_v47 = vmul.f32 0.00048828125, %v1985_v54 }
 0x322   : > { %v2612_v12 = vpack.c.bf16 %v2029_v47, %v2028_v30 }
 0x324   : > { %2613 = vmatpush3.bf16.msra.mxu0 %v2612_v12 }
 0x325   : > { %v1994_v0 = vpop.xlane.xlu0 %1993  ;;  %2614 = vmatprep.subr.bf16.mxu0 %v2784_v10 }
 0x326   : > { %v2032_v31 = vmul.f32 0.00048828125, %v1994_v0 }
 0x329   : > { %v2000_v37 = vpop.xlane.xlu0 %1999 }
 0x32a   : > { %v2034_v32 = vmul.f32 0.00048828125, %v2000_v37 }
 0x32f   : > { %v1988_v46 = vpop.xlane.xlu1 %1987 }
 0x330   : > { %v2030_v48 = vmul.f32 0.00048828125, %v1988_v46 }
 0x333   : > { %v1991_v61 = vpop.xlane.xlu1 %1990 }
 0x334   : > { %v2031_v18 = vmul.f32 0.00048828125, %v1991_v61 }
 0x335   : > { %v2006_v22 = vpop.xlane.xlu0 %2005 }
 0x336   : > { %v2615_v9 = vpack.c.bf16 %v2031_v18, %v2030_v48  ;;  %v2036_v14 = vmul.f32 0.00048828125, %v2006_v22 }
 0x337   : > { %v1997_v33 = vpop.xlane.xlu1 %1996 }
 0x338   : > { %v2033_v29 = vmul.f32 0.00048828125, %v1997_v33  ;;  %2616 = vmatpush3.bf16.msra.mxu0 %v2615_v9 }
 0x339   : > { %2617 = vmatprep.subr.bf16.mxu0 %v2784_v10  ;;  %v2012_v5 = vpop.xlane.xlu0 %2011 }
 0x33a   : > { %v2618_v42 = vpack.c.bf16 %v2033_v29, %v2032_v31  ;;  %v2038_v40 = vmul.f32 0.00048828125, %v2012_v5 }
 0x33b   : > { %v2003_v11 = vpop.xlane.xlu1 %2002 }
 0x33c   : > { %v2035_v53 = vmul.f32 0.00048828125, %v2003_v11  ;;  %2619 = vmatpush3.bf16.msra.mxu0 %v2618_v42 }
 0x33d   : > { %2620 = vmatprep.subr.bf16.mxu0 %v2784_v10 }
 0x33e   : > { %v2621_v27 = vpack.c.bf16 %v2035_v53, %v2034_v32 }
 0x33f   : > { %v2009_v55 = vpop.xlane.xlu1 %2008 }
 0x340   : > { %v2037_v26 = vmul.f32 0.00048828125, %v2009_v55  ;;  %2622 = vmatpush3.bf16.msra.mxu0 %v2621_v27 }
 0x341   : > { %2623 = vmatprep.subr.bf16.mxu0 %v2784_v10  ;;  %v2018_v41 = vpop.xlane.xlu0 %2017 }
 0x342   : > { %v2624_v21 = vpack.c.bf16 %v2037_v26, %v2036_v14  ;;  %v2040_v25 = vmul.f32 0.00048828125, %v2018_v41 }
 0x343   : > { %v2015_v38 = vpop.xlane.xlu1 %2014 }
 0x344   : > { %v2039_v57 = vmul.f32 0.00048828125, %v2015_v38  ;;  %2625 = vmatpush3.bf16.msra.mxu0 %v2624_v21 }
 0x345   : > { %2626 = vmatprep.subr.bf16.mxu0 %v2784_v10  ;;  %v2024_v59 = vpop.xlane.xlu0 %2023 }
 0x346   : > { %v2627_v24 = vpack.c.bf16 %v2039_v57, %v2038_v40  ;;  %v2042_v8 = vmul.f32 0.00048828125, %v2024_v59 }
 0x347   : > { %v2021_v56 = vpop.xlane.xlu1 %2020 }
 0x348   : > { %v2041_v60 = vmul.f32 0.00048828125, %v2021_v56  ;;  %2628 = vmatpush3.bf16.msra.mxu0 %v2627_v24 }
 0x349   : > { %2629 = vmatprep.subr.bf16.mxu0 %v2784_v10 }
 0x34a   : > { %v2630_v39 = vpack.c.bf16 %v2041_v60, %v2040_v25 }
 0x34b   : > { %v2027_v34 = vpop.xlane.xlu1 %2026 }
 0x34c   : > { %v2043_v28 = vmul.f32 0.00048828125, %v2027_v34  ;;  %2631 = vmatpush3.bf16.msra.mxu0 %v2630_v39 }
 0x34d   : > { %2632 = vmatprep.subr.bf16.mxu0 %v2784_v10 }
 0x34e   : > { %v2633_v44 = vpack.c.bf16 %v2043_v28, %v2042_v8 }
 0x350   : > { %2634 = vmatpush3.bf16.msra.mxu0 %v2633_v44 }
 0x353   : > { %2609 = vmatmul.mubr.f32.vlgmr.msra.gmra.mrb[0].mxu0 %v2044_v43 }
 0x426   : > { %v2112_v17 = vpop.f32.mrb[0].mxu0 }
 0x427   : > { %v2113_v2 = vadd.f32 %v2112_v17, %v2045_v16  ;;  %v2610_v36 = vpop.f32.mrb[1].mxu0 }
 0x429   : > { %2116 = vst.msk [vmem:[%s2948_s26] sm:$0xff] %vm1808_vm3, %v2113_v2 }
 0x42a PF: > { %s14_s21 = sadd.s32 1, %s2781_s21   ;;  %s3830_s15 = smov %s2761_s16 }
 0x42b   : > { %p11_p13 = scmp.ge.s32.totalorder %s14_s21, 6   ;;  %s3831_s16 = smov %s2863_s28 }
 0x42c   : > { %s3832_s17 = smov %s2773_s19  ;;  %s3833_s18 = smov %s2777_s20 }
 0x42d   : > { %s3834_s19 = smov %s3837_s22  ;;  %s3835_s20 = smov %s3841_s23 }
 0x42e   :  { %13 = sbr.rel (!%p11_p13) target bundleno = 4 (0x4), region = 127 }

</bundles_post_ra>
